<compile_context>
chip_gen: v7x
topology: tpu7x:2x2x1
jax: 0.10.0
libtpu: 0.0.40
codegen_flags: <defaults>
</compile_context>

<pallas_src>
import functools

import jax
import jax.numpy as jnp
from jax.experimental import pallas as pl
from jax.experimental.pallas import tpu as pltpu

IN_DIM = 28 * 28 * 3       # 2352
H1 = 128
H2 = 32
LATENT = 2


def _round_up(x, m):
    return (x + m - 1) // m * m


@functools.lru_cache(maxsize=1)
def _chip_config():
    """(tb_max, vmem_limit_bytes, bf16_eup) picked from the attached TPU generation."""
    kind = ""
    try:
        kind = jax.devices()[0].device_kind.lower()
    except Exception:
        pass
    big_vmem = any(t in kind for t in ("v5", "v6"))                   # 128 MiB VMEM/TC
    bf16_eup = not any(t in kind for t in ("v2", "v3", "v4", "v5"))   # v6e / v7x only
    tb_max = 1024 if big_vmem else 512                                 # v7x: 64 MiB/TC
    vmem_limit = (96 if big_vmem else 48) * 1024 * 1024
    return tb_max, vmem_limit, bf16_eup


def _ae_kernel(x_ref,
               w1_ref, b1_ref, w2_ref, b2_ref, w3_ref, b3_ref,
               w34_ref, b34_ref, w5_ref, b5_ref, w6_ref, b6_ref,
               enc_ref, dec_ref, *, sigmoid_dtype):
    """One batch-tile of the fused autoencoder forward pass.

    Weights are bf16 (half the HBM DMA); all dots accumulate in f32 on the MXU;
    bias/ReLU math stays f32.  x arrives f32 from HBM and is cast to bf16 only for
    the MXU — no separate wrapper-side cast/pad pass over the input.
    """
    x = x_ref[...].astype(jnp.bfloat16)                        # (TB, 2352)

    # ---------------- encoder ----------------
    h = jnp.dot(x, w1_ref[...], preferred_element_type=jnp.float32) + b1_ref[...]
    h = jnp.maximum(h, 0.0)
    h = jnp.dot(h.astype(jnp.bfloat16), w2_ref[...],
                preferred_element_type=jnp.float32) + b2_ref[...]
    h = jnp.maximum(h, 0.0)
    h_bf = h.astype(jnp.bfloat16)                               # (TB, 32)

    z = jnp.dot(h_bf, w3_ref[...], preferred_element_type=jnp.float32) + b3_ref[...]
    enc_ref[...] = z.astype(enc_ref.dtype)

    # ---------------- decoder ----------------
    # Latent has no activation, so Linear(32,2) @ Linear(2,32) is pre-fused in the
    # wrapper into W34 (32x32) / b34 — avoids the K=2 MXU matmul.
    d = jnp.dot(h_bf, w34_ref[...], preferred_element_type=jnp.float32) + b34_ref[...]
    d = jnp.maximum(d, 0.0)
    d = jnp.dot(d.astype(jnp.bfloat16), w5_ref[...],
                preferred_element_type=jnp.float32) + b5_ref[...]
    d = jnp.maximum(d, 0.0)
    d = jnp.dot(d.astype(jnp.bfloat16), w6_ref[...],
                preferred_element_type=jnp.float32) + b6_ref[...]

    # Sigmoid as a single EUP push per element: sigmoid(x) = 0.5*tanh(0.5*x) + 0.5.
    # bf16 on v6e/v7x (bf16 EUP path), f32 on v5e and older (no bf16 VPU/EUP).
    d = d.astype(sigmoid_dtype)
    dec = jnp.tanh(d * 0.5) * 0.5 + 0.5
    dec_ref[...] = dec.astype(dec_ref.dtype)


def prepare_params(params):
    """Cast weights to bf16 and fuse W3@W4 / b3@W4+b4 (no activation on the latent).

    `params` is the PyTorch-style list of (W, b) with W shaped (in, out).
    Returns the flat 12-tensor tuple consumed by the kernel.
    """
    (w1, b1), (w2, b2), (w3, b3), (w4, b4), (w5, b5), (w6, b6) = params

    q = lambda w: w.astype(jnp.bfloat16)
    fb = lambda b: b.reshape(1, -1).astype(jnp.float32)

    # Fuse encoder->decoder boundary (no activation on the latent); rank-2 bottleneck
    # is preserved exactly, only the bf16 rounding point differs.
    w4f = q(w4).astype(jnp.float32)
    w34 = (q(w3).astype(jnp.float32) @ w4f).astype(jnp.bfloat16)        # (32, 32)
    b34 = (b3.astype(jnp.float32) @ w4f + b4.astype(jnp.float32)).reshape(1, -1)

    return (q(w1), fb(b1), q(w2), fb(b2), q(w3), fb(b3),
            w34, b34.astype(jnp.float32), q(w5), fb(b5), q(w6), fb(b6))


@functools.partial(jax.jit, static_argnames=("tb_max", "vmem_limit", "bf16_eup"))
def _forward_impl(x, prepped, *, tb_max, vmem_limit, bf16_eup):
    B = x.shape[0]
    if x.dtype != jnp.float32:
        x = x.astype(jnp.float32)

    if B >= 256:
        # >= 2 grid steps so the "parallel" batch axis shards across v7x's 2 TCs;
        # batch tile a multiple of 16 (bf16 sublane granularity), capped per chip.
        tb = min(tb_max, _round_up(pl.cdiv(B, 2), 16))
    else:
        tb = B                      # single full-batch block (full array dim: legal)
    nb = pl.cdiv(B, tb)             # partial last block masked by Pallas on writeback

    sig_dtype = jnp.bfloat16 if bf16_eup else jnp.float32
    kernel = functools.partial(_ae_kernel, sigmoid_dtype=sig_dtype)

    flops = 2 * B * (IN_DIM * H1 + H1 * H2 + H2 * LATENT
                     + H2 * H2 + H2 * H1 + H1 * IN_DIM)
    bytes_accessed = (B * IN_DIM * 4                                   # x read (f32)
                      + sum(int(t.size) * t.dtype.itemsize for t in prepped)
                      + B * LATENT * 4                                 # enc write
                      + B * IN_DIM * 2)                                # dec write (bf16)

    # Weights/biases: full block, constant index_map -> DMA'd once, resident in VMEM
    # across all batch-tile grid steps (Mosaic keeps one buffer for revisited blocks).
    const_spec = lambda t: pl.BlockSpec(t.shape, lambda i: (0, 0))
    in_specs = ([pl.BlockSpec((tb, IN_DIM), lambda i: (i, 0))]
                + [const_spec(t) for t in prepped])
    out_specs = (pl.BlockSpec((tb, LATENT), lambda i: (i, 0)),
                 pl.BlockSpec((tb, IN_DIM), lambda i: (i, 0)))

    enc, dec = pl.pallas_call(
        kernel,
        grid=(nb,),
        in_specs=in_specs,
        out_specs=out_specs,
        out_shape=(jax.ShapeDtypeStruct((B, LATENT), jnp.float32),
                   jax.ShapeDtypeStruct((B, IN_DIM), jnp.bfloat16)),
        compiler_params=pltpu.CompilerParams(
            dimension_semantics=("parallel",),
            vmem_limit_bytes=vmem_limit),
        cost_estimate=pl.CostEstimate(flops=int(flops),
                                      transcendentals=int(B * IN_DIM),
                                      bytes_accessed=int(bytes_accessed)),
    )(x, *prepped)
    return enc, dec


def autoencoder_forward(x, prepped):
    """x: (B, 2352) float32.  prepped: output of prepare_params().

    Returns (encoded (B, 2) f32, decoded (B, 2352) bf16) — no padding, no slicing.
    """
    tb_max, vmem_limit, bf16_eup = _chip_config()
    return _forward_impl(x, prepped, tb_max=tb_max,
                         vmem_limit=vmem_limit, bf16_eup=bf16_eup)


def init_params(key):
    """Deterministic init mimicking PyTorch nn.Linear default (U(-k, k), k=1/sqrt(fan_in))."""
    dims = [(IN_DIM, H1), (H1, H2), (H2, LATENT),      # encoder
            (LATENT, H2), (H2, H1), (H1, IN_DIM)]      # decoder
    params = []
    for (fan_in, fan_out) in dims:
        key, kw, kb = jax.random.split(key, 3)
        bound = 1.0 / jnp.sqrt(float(fan_in))
        w = jax.random.uniform(kw, (fan_in, fan_out), jnp.float32, -bound, bound)
        b = jax.random.uniform(kb, (fan_out,), jnp.float32, -bound, bound)
        params.append((w, b))
    return params


def reference_forward(x, params):
    """Pure-JAX reference (unfused, PyTorch semantics) with the same bf16 weight quantization."""
    qf = lambda w: w.astype(jnp.bfloat16).astype(jnp.float32)
    (w1, b1), (w2, b2), (w3, b3), (w4, b4), (w5, b5), (w6, b6) = params
    h = jnp.maximum(x @ qf(w1) + b1, 0.0)
    h = jnp.maximum(h @ qf(w2) + b2, 0.0)
    enc = h @ qf(w3) + b3
    d = jnp.maximum(enc @ qf(w4) + b4, 0.0)
    d = jnp.maximum(d @ qf(w5) + b5, 0.0)
    dec = jax.nn.sigmoid(d @ qf(w6) + b6)
    return enc, dec


if __name__ == "__main__":
    key = jax.random.PRNGKey(0)
    key, kx = jax.random.split(key)

    B = 16  # small test batch (bf16 sublane-aligned)
    x = jax.random.uniform(kx, (B, IN_DIM), jnp.float32)  # image-like inputs in [0, 1)

    params = init_params(key)
    prepped = prepare_params(params)

    enc, dec = autoencoder_forward(x, prepped)
    jax.block_until_ready((enc, dec))

    # sanity check against pure-JAX reference (bf16 weights/activations -> loose tolerance)
    enc_ref, dec_ref = reference_forward(x, params)
    assert enc.shape == (B, LATENT) and dec.shape == (B, IN_DIM)
    assert jnp.allclose(enc, enc_ref, atol=3e-2, rtol=3e-2)
    assert jnp.allclose(dec.astype(jnp.float32), dec_ref, atol=3e-2, rtol=3e-2)

    print("KERNEL_OK")
</pallas_src>

<mosaic_0001>
module attributes {stable_mosaic.version = 11 : i64} {
  func.func @_ae_kernel(%arg0: i32, %arg1: memref<16x2352xf32, #tpu.memory_space<vmem>>, %arg2: memref<2352x128xbf16, #tpu.memory_space<vmem>>, %arg3: memref<1x128xf32, #tpu.memory_space<vmem>>, %arg4: memref<128x32xbf16, #tpu.memory_space<vmem>>, %arg5: memref<1x32xf32, #tpu.memory_space<vmem>>, %arg6: memref<32x2xbf16, #tpu.memory_space<vmem>>, %arg7: memref<1x2xf32, #tpu.memory_space<vmem>>, %arg8: memref<32x32xbf16, #tpu.memory_space<vmem>>, %arg9: memref<1x32xf32, #tpu.memory_space<vmem>>, %arg10: memref<32x128xbf16, #tpu.memory_space<vmem>>, %arg11: memref<1x128xf32, #tpu.memory_space<vmem>>, %arg12: memref<128x2352xbf16, #tpu.memory_space<vmem>>, %arg13: memref<1x2352xf32, #tpu.memory_space<vmem>>, %arg14: memref<16x2xf32, #tpu.memory_space<vmem>>, %arg15: memref<16x2352xbf16, #tpu.memory_space<vmem>>) attributes {dimension_semantics = [#tpu.dimension_semantics<parallel>], iteration_bounds = array<i64: 1>, scalar_prefetch = 0 : i64, scratch_operands = 0 : i64, tpu.core_type = #tpu.core_type<tc>, window_params = [{transform_indices = @transform_0, window_bounds = array<i64: 16, 2352>}, {pipeline_mode = #tpu.pipeline_mode<synchronous>, transform_indices = @transform_1, window_bounds = array<i64: 2352, 128>}, {pipeline_mode = #tpu.pipeline_mode<synchronous>, transform_indices = @transform_2, window_bounds = array<i64: 1, 128>}, {pipeline_mode = #tpu.pipeline_mode<synchronous>, transform_indices = @transform_3, window_bounds = array<i64: 128, 32>}, {pipeline_mode = #tpu.pipeline_mode<synchronous>, transform_indices = @transform_4, window_bounds = array<i64: 1, 32>}, {pipeline_mode = #tpu.pipeline_mode<synchronous>, transform_indices = @transform_5, window_bounds = array<i64: 32, 2>}, {pipeline_mode = #tpu.pipeline_mode<synchronous>, transform_indices = @transform_6, window_bounds = array<i64: 1, 2>}, {pipeline_mode = #tpu.pipeline_mode<synchronous>, transform_indices = @transform_7, window_bounds = array<i64: 32, 32>}, {pipeline_mode = #tpu.pipeline_mode<synchronous>, transform_indices = @transform_8, window_bounds = array<i64: 1, 32>}, {pipeline_mode = #tpu.pipeline_mode<synchronous>, transform_indices = @transform_9, window_bounds = array<i64: 32, 128>}, {pipeline_mode = #tpu.pipeline_mode<synchronous>, transform_indices = @transform_10, window_bounds = array<i64: 1, 128>}, {pipeline_mode = #tpu.pipeline_mode<synchronous>, transform_indices = @transform_11, window_bounds = array<i64: 128, 2352>}, {pipeline_mode = #tpu.pipeline_mode<synchronous>, transform_indices = @transform_12, window_bounds = array<i64: 1, 2352>}, {transform_indices = @transform_13, window_bounds = array<i64: 16, 2>}, {transform_indices = @transform_14, window_bounds = array<i64: 16, 2352>}]} {
    %c0 = arith.constant 0 : index
    %c0_0 = arith.constant 0 : index
    %0 = vector.load %arg1[%c0, %c0_0] : memref<16x2352xf32, #tpu.memory_space<vmem>>, vector<16x2352xf32>
    %1 = arith.truncf %0 : vector<16x2352xf32> to vector<16x2352xbf16>
    %c0_1 = arith.constant 0 : index
    %c0_2 = arith.constant 0 : index
    %2 = vector.load %arg2[%c0_1, %c0_2] : memref<2352x128xbf16, #tpu.memory_space<vmem>>, vector<2352x128xbf16>
    %cst = arith.constant dense<0.000000e+00> : vector<16x128xf32>
    %3 = tpu.matmul %1, %2, %cst {dimension_numbers = #tpu.dot_dimension_numbers<[1], [0], [0], [1], [0, 0, 1, 1], [], []>} : vector<16x2352xbf16>, vector<2352x128xbf16>, vector<16x128xf32> -> vector<16x128xf32>
    %c0_3 = arith.constant 0 : index
    %c0_4 = arith.constant 0 : index
    %4 = vector.load %arg3[%c0_3, %c0_4] : memref<1x128xf32, #tpu.memory_space<vmem>>, vector<1x128xf32>
    %5 = vector.broadcast %4 : vector<1x128xf32> to vector<16x128xf32>
    %6 = arith.addf %3, %5 : vector<16x128xf32>
    %cst_5 = arith.constant 0.000000e+00 : f32
    %7 = vector.broadcast %cst_5 : f32 to vector<16x128xf32>
    %8 = arith.maximumf %6, %7 : vector<16x128xf32>
    %9 = arith.truncf %8 : vector<16x128xf32> to vector<16x128xbf16>
    %c0_6 = arith.constant 0 : index
    %c0_7 = arith.constant 0 : index
    %10 = vector.load %arg4[%c0_6, %c0_7] : memref<128x32xbf16, #tpu.memory_space<vmem>>, vector<128x32xbf16>
    %cst_8 = arith.constant dense<0.000000e+00> : vector<16x32xf32>
    %11 = tpu.matmul %9, %10, %cst_8 {dimension_numbers = #tpu.dot_dimension_numbers<[1], [0], [0], [1], [0, 0, 1, 1], [], []>} : vector<16x128xbf16>, vector<128x32xbf16>, vector<16x32xf32> -> vector<16x32xf32>
    %c0_9 = arith.constant 0 : index
    %c0_10 = arith.constant 0 : index
    %12 = vector.load %arg5[%c0_9, %c0_10] : memref<1x32xf32, #tpu.memory_space<vmem>>, vector<1x32xf32>
    %13 = vector.broadcast %12 : vector<1x32xf32> to vector<16x32xf32>
    %14 = arith.addf %11, %13 : vector<16x32xf32>
    %cst_11 = arith.constant 0.000000e+00 : f32
    %15 = vector.broadcast %cst_11 : f32 to vector<16x32xf32>
    %16 = arith.maximumf %14, %15 : vector<16x32xf32>
    %17 = arith.truncf %16 : vector<16x32xf32> to vector<16x32xbf16>
    %c0_12 = arith.constant 0 : index
    %c0_13 = arith.constant 0 : index
    %18 = vector.load %arg6[%c0_12, %c0_13] : memref<32x2xbf16, #tpu.memory_space<vmem>>, vector<32x2xbf16>
    %cst_14 = arith.constant dense<0.000000e+00> : vector<16x2xf32>
    %19 = tpu.matmul %17, %18, %cst_14 {dimension_numbers = #tpu.dot_dimension_numbers<[1], [0], [0], [1], [0, 0, 1, 1], [], []>} : vector<16x32xbf16>, vector<32x2xbf16>, vector<16x2xf32> -> vector<16x2xf32>
    %c0_15 = arith.constant 0 : index
    %c0_16 = arith.constant 0 : index
    %20 = vector.load %arg7[%c0_15, %c0_16] : memref<1x2xf32, #tpu.memory_space<vmem>>, vector<1x2xf32>
    %21 = vector.broadcast %20 : vector<1x2xf32> to vector<16x2xf32>
    %22 = arith.addf %19, %21 : vector<16x2xf32>
    %c0_17 = arith.constant 0 : index
    %c0_18 = arith.constant 0 : index
    %23 = vector.load %arg14[%c0_17, %c0_18] : memref<16x2xf32, #tpu.memory_space<vmem>>, vector<16x2xf32>
    tpu.vector_store %arg14[%c0_17, %c0_18], %22 {strides = array<i32>} : memref<16x2xf32, #tpu.memory_space<vmem>>, vector<16x2xf32>,
    %c0_19 = arith.constant 0 : index
    %c0_20 = arith.constant 0 : index
    %24 = vector.load %arg8[%c0_19, %c0_20] : memref<32x32xbf16, #tpu.memory_space<vmem>>, vector<32x32xbf16>
    %cst_21 = arith.constant dense<0.000000e+00> : vector<16x32xf32>
    %25 = tpu.matmul %17, %24, %cst_21 {dimension_numbers = #tpu.dot_dimension_numbers<[1], [0], [0], [1], [0, 0, 1, 1], [], []>} : vector<16x32xbf16>, vector<32x32xbf16>, vector<16x32xf32> -> vector<16x32xf32>
    %c0_22 = arith.constant 0 : index
    %c0_23 = arith.constant 0 : index
    %26 = vector.load %arg9[%c0_22, %c0_23] : memref<1x32xf32, #tpu.memory_space<vmem>>, vector<1x32xf32>
    %27 = vector.broadcast %26 : vector<1x32xf32> to vector<16x32xf32>
    %28 = arith.addf %25, %27 : vector<16x32xf32>
    %cst_24 = arith.constant 0.000000e+00 : f32
    %29 = vector.broadcast %cst_24 : f32 to vector<16x32xf32>
    %30 = arith.maximumf %28, %29 : vector<16x32xf32>
    %31 = arith.truncf %30 : vector<16x32xf32> to vector<16x32xbf16>
    %c0_25 = arith.constant 0 : index
    %c0_26 = arith.constant 0 : index
    %32 = vector.load %arg10[%c0_25, %c0_26] : memref<32x128xbf16, #tpu.memory_space<vmem>>, vector<32x128xbf16>
    %cst_27 = arith.constant dense<0.000000e+00> : vector<16x128xf32>
    %33 = tpu.matmul %31, %32, %cst_27 {dimension_numbers = #tpu.dot_dimension_numbers<[1], [0], [0], [1], [0, 0, 1, 1], [], []>} : vector<16x32xbf16>, vector<32x128xbf16>, vector<16x128xf32> -> vector<16x128xf32>
    %c0_28 = arith.constant 0 : index
    %c0_29 = arith.constant 0 : index
    %34 = vector.load %arg11[%c0_28, %c0_29] : memref<1x128xf32, #tpu.memory_space<vmem>>, vector<1x128xf32>
    %35 = vector.broadcast %34 : vector<1x128xf32> to vector<16x128xf32>
    %36 = arith.addf %33, %35 : vector<16x128xf32>
    %cst_30 = arith.constant 0.000000e+00 : f32
    %37 = vector.broadcast %cst_30 : f32 to vector<16x128xf32>
    %38 = arith.maximumf %36, %37 : vector<16x128xf32>
    %39 = arith.truncf %38 : vector<16x128xf32> to vector<16x128xbf16>
    %c0_31 = arith.constant 0 : index
    %c0_32 = arith.constant 0 : index
    %40 = vector.load %arg12[%c0_31, %c0_32] : memref<128x2352xbf16, #tpu.memory_space<vmem>>, vector<128x2352xbf16>
    %cst_33 = arith.constant dense<0.000000e+00> : vector<16x2352xf32>
    %41 = tpu.matmul %39, %40, %cst_33 {dimension_numbers = #tpu.dot_dimension_numbers<[1], [0], [0], [1], [0, 0, 1, 1], [], []>} : vector<16x128xbf16>, vector<128x2352xbf16>, vector<16x2352xf32> -> vector<16x2352xf32>
    %c0_34 = arith.constant 0 : index
    %c0_35 = arith.constant 0 : index
    %42 = vector.load %arg13[%c0_34, %c0_35] : memref<1x2352xf32, #tpu.memory_space<vmem>>, vector<1x2352xf32>
    %43 = vector.broadcast %42 : vector<1x2352xf32> to vector<16x2352xf32>
    %44 = arith.addf %41, %43 : vector<16x2352xf32>
    %45 = arith.truncf %44 : vector<16x2352xf32> to vector<16x2352xbf16>
    %cst_36 = arith.constant 5.000000e-01 : bf16
    %46 = vector.broadcast %cst_36 : bf16 to vector<16x2352xbf16>
    %47 = arith.mulf %45, %46 : vector<16x2352xbf16>
    %48 = math.tanh %47 : vector<16x2352xbf16>
    %cst_37 = arith.constant 5.000000e-01 : bf16
    %49 = vector.broadcast %cst_37 : bf16 to vector<16x2352xbf16>
    %50 = arith.mulf %48, %49 : vector<16x2352xbf16>
    %cst_38 = arith.constant 5.000000e-01 : bf16
    %51 = vector.broadcast %cst_38 : bf16 to vector<16x2352xbf16>
    %52 = arith.addf %50, %51 : vector<16x2352xbf16>
    %c0_39 = arith.constant 0 : index
    %c0_40 = arith.constant 0 : index
    %53 = vector.load %arg15[%c0_39, %c0_40] : memref<16x2352xbf16, #tpu.memory_space<vmem>>, vector<16x2352xbf16>
    tpu.vector_store %arg15[%c0_39, %c0_40], %52 {strides = array<i32>} : memref<16x2352xbf16, #tpu.memory_space<vmem>>, vector<16x2352xbf16>,
    return
  }
  func.func @transform_0(%arg0: i32) -> (i32, i32) {
    %c0_i32 = arith.constant 0 : i32
    %c0_i32_0 = arith.constant 0 : i32
    return %arg0, %c0_i32 : i32, i32
  }
  func.func @transform_1(%arg0: i32) -> (i32, i32) {
    %c0_i32 = arith.constant 0 : i32
    %c0_i32_0 = arith.constant 0 : i32
    %c0_i32_1 = arith.constant 0 : i32
    return %c0_i32, %c0_i32_0 : i32, i32
  }
  func.func @transform_2(%arg0: i32) -> (i32, i32) {
    %c0_i32 = arith.constant 0 : i32
    %c0_i32_0 = arith.constant 0 : i32
    %c0_i32_1 = arith.constant 0 : i32
    return %c0_i32, %c0_i32_0 : i32, i32
  }
  func.func @transform_3(%arg0: i32) -> (i32, i32) {
    %c0_i32 = arith.constant 0 : i32
    %c0_i32_0 = arith.constant 0 : i32
    %c0_i32_1 = arith.constant 0 : i32
    return %c0_i32, %c0_i32_0 : i32, i32
  }
  func.func @transform_4(%arg0: i32) -> (i32, i32) {
    %c0_i32 = arith.constant 0 : i32
    %c0_i32_0 = arith.constant 0 : i32
    %c0_i32_1 = arith.constant 0 : i32
    return %c0_i32, %c0_i32_0 : i32, i32
  }
  func.func @transform_5(%arg0: i32) -> (i32, i32) {
    %c0_i32 = arith.constant 0 : i32
    %c0_i32_0 = arith.constant 0 : i32
    %c0_i32_1 = arith.constant 0 : i32
    return %c0_i32, %c0_i32_0 : i32, i32
  }
  func.func @transform_6(%arg0: i32) -> (i32, i32) {
    %c0_i32 = arith.constant 0 : i32
    %c0_i32_0 = arith.constant 0 : i32
    %c0_i32_1 = arith.constant 0 : i32
    return %c0_i32, %c0_i32_0 : i32, i32
  }
  func.func @transform_7(%arg0: i32) -> (i32, i32) {
    %c0_i32 = arith.constant 0 : i32
    %c0_i32_0 = arith.constant 0 : i32
    %c0_i32_1 = arith.constant 0 : i32
    return %c0_i32, %c0_i32_0 : i32, i32
  }
  func.func @transform_8(%arg0: i32) -> (i32, i32) {
    %c0_i32 = arith.constant 0 : i32
    %c0_i32_0 = arith.constant 0 : i32
    %c0_i32_1 = arith.constant 0 : i32
    return %c0_i32, %c0_i32_0 : i32, i32
  }
  func.func @transform_9(%arg0: i32) -> (i32, i32) {
    %c0_i32 = arith.constant 0 : i32
    %c0_i32_0 = arith.constant 0 : i32
    %c0_i32_1 = arith.constant 0 : i32
    return %c0_i32, %c0_i32_0 : i32, i32
  }
  func.func @transform_10(%arg0: i32) -> (i32, i32) {
    %c0_i32 = arith.constant 0 : i32
    %c0_i32_0 = arith.constant 0 : i32
    %c0_i32_1 = arith.constant 0 : i32
    return %c0_i32, %c0_i32_0 : i32, i32
  }
  func.func @transform_11(%arg0: i32) -> (i32, i32) {
    %c0_i32 = arith.constant 0 : i32
    %c0_i32_0 = arith.constant 0 : i32
    %c0_i32_1 = arith.constant 0 : i32
    return %c0_i32, %c0_i32_0 : i32, i32
  }
  func.func @transform_12(%arg0: i32) -> (i32, i32) {
    %c0_i32 = arith.constant 0 : i32
    %c0_i32_0 = arith.constant 0 : i32
    %c0_i32_1 = arith.constant 0 : i32
    return %c0_i32, %c0_i32_0 : i32, i32
  }
  func.func @transform_13(%arg0: i32) -> (i32, i32) {
    %c0_i32 = arith.constant 0 : i32
    %c0_i32_0 = arith.constant 0 : i32
    return %arg0, %c0_i32 : i32, i32
  }
  func.func @transform_14(%arg0: i32) -> (i32, i32) {
    %c0_i32 = arith.constant 0 : i32
    %c0_i32_0 = arith.constant 0 : i32
    return %arg0, %c0_i32 : i32, i32
  }
}

</mosaic_0001>

<bundles_post_ra>
// kernel: _forward_impl.1
= control target key start
LH: loop header
LB: loop body
LE: loop exit
PB: predicated region body
PF: predicated region fallthrough
CT: control target
= control target key end

     0   :  { %vm4818_vm0 = vmmov 0   ;;  %vm1289_vm1 = vcmask 392192   ;;  %s6109_s0 = inlined_call_operand.vmem [shape: f32[16,2352], index: 0, kind: input, shape index: {}]   ;;  %s6110_s1 = inlined_call_operand.vmem [shape: bf16[2352,128], index: 1, kind: input, shape index: {}]   ;;  %s6111_s2 = inlined_call_operand.vmem [shape: f32[1,128], index: 2, kind: input, shape index: {}]   ;;  %s6112_s3 = inlined_call_operand.vmem [shape: bf16[128,32], index: 3, kind: input, shape index: {}]   ;;  %s6113_s4 = inlined_call_operand.vmem [shape: f32[1,32], index: 4, kind: input, shape index: {}]   ;;  %s6114_s5 = inlined_call_operand.vmem [shape: bf16[32,2], index: 5, kind: input, shape index: {}]   ;;  %s6115_s6 = inlined_call_operand.vmem [shape: f32[1,2], index: 6, kind: input, shape index: {}]   ;;  %s6116_s7 = inlined_call_operand.vmem [shape: bf16[32,32], index: 7, kind: input, shape index: {}]   ;;  %s6117_s8 = inlined_call_operand.vmem [shape: f32[1,32], index: 8, kind: input, shape index: {}]   ;;  %s6118_s9 = inlined_call_operand.vmem [shape: bf16[32,128], index: 9, kind: input, shape index: {}]   ;;  %s6119_s10 = inlined_call_operand.vmem [shape: f32[1,128], index: 10, kind: input, shape index: {}]   ;;  %s6120_s11 = inlined_call_operand.vmem [shape: bf16[128,2352], index: 11, kind: input, shape index: {}]   ;;  %s6121_s12 = inlined_call_operand.vmem [shape: f32[1,2352], index: 12, kind: input, shape index: {}]   ;;  %s6122_s13 = inlined_call_operand.vmem [shape: f32[16,2], index: 13, kind: output, shape index: {0}]   ;;  %s6123_s14 = inlined_call_operand.hbm [shape: bf16[16,2352], index: 14, kind: output, shape index: {1}]  }
   0x1   :  { %v4370_v0 = vld [vmem:[%s6110_s1 + $0x40] sm:$0xff]   ;;  %v4374_v4 = vld [vmem:[%s6110_s1 + $0x48] sm:$0xff]   ;;  %v4378_v8 = vld [vmem:[%s6110_s1 + $0x50] sm:$0xff]  }
   0x2   :  { %v4371_v1 = vld [vmem:[%s6110_s1] sm:$0xff]   ;;  %4061 = vmatprep.subr.bf16.mxu0 %v4370_v0  ;;  %v4375_v5 = vld [vmem:[%s6110_s1 + $0x8] sm:$0xff]   ;;  %v4379_v9 = vld [vmem:[%s6110_s1 + $0x10] sm:$0xff]  }
   0x3   :  { %v4372_v2 = vld [vmem:[%s6110_s1 + $0xc0] sm:$0xff]   ;;  %4062 = vmatpush3.bf16.msra.mxu0 %v4371_v1  ;;  %v4376_v6 = vld [vmem:[%s6110_s1 + $0xc8] sm:$0xff]   ;;  %v4380_v10 = vld [vmem:[%s6110_s1 + $0xd0] sm:$0xff]  }
   0x4   :  { %v4373_v3 = vld [vmem:[%s6110_s1 + $0x80] sm:$0xff]   ;;  %4083 = vmatprep.subr.bf16.mxu1 %v4372_v2  ;;  %4063 = vmatprep.subr.bf16.mxu0 %v4374_v4  ;;  %v4377_v7 = vld [vmem:[%s6110_s1 + $0x88] sm:$0xff]   ;;  %v4381_v11 = vld [vmem:[%s6110_s1 + $0x90] sm:$0xff]  }
   0x5   :  { %4084 = vmatpush3.bf16.msra.mxu1 %v4373_v3  ;;  %v4382_v12 = vld [vmem:[%s6110_s1 + $0x58] sm:$0xff]   ;;  %v4386_v16 = vld [vmem:[%s6110_s1 + $0x60] sm:$0xff]   ;;  %v4390_v20 = vld [vmem:[%s6110_s1 + $0x68] sm:$0xff]  }
   0x6   :  { %4085 = vmatprep.subr.bf16.mxu1 %v4376_v6  ;;  %v4383_v13 = vld [vmem:[%s6110_s1 + $0x18] sm:$0xff]   ;;  %v4387_v17 = vld [vmem:[%s6110_s1 + $0x20] sm:$0xff]   ;;  %v4391_v21 = vld [vmem:[%s6110_s1 + $0x28] sm:$0xff]  }
   0x7   :  { %4064 = vmatpush3.bf16.msra.mxu0 %v4375_v5  ;;  %v4384_v14 = vld [vmem:[%s6110_s1 + $0xd8] sm:$0xff]   ;;  %v4388_v18 = vld [vmem:[%s6110_s1 + $0xe0] sm:$0xff]   ;;  %v4392_v22 = vld [vmem:[%s6110_s1 + $0xe8] sm:$0xff]  }
   0x8   :  { %4065 = vmatprep.subr.bf16.mxu0 %v4378_v8  ;;  %v4385_v15 = vld [vmem:[%s6110_s1 + $0x98] sm:$0xff]   ;;  %v4389_v19 = vld [vmem:[%s6110_s1 + $0xa0] sm:$0xff]   ;;  %v4393_v23 = vld [vmem:[%s6110_s1 + $0xa8] sm:$0xff]  }
   0x9   :  { %4086 = vmatpush3.bf16.msra.mxu1 %v4377_v7  ;;  %v4394_v24 = vld [vmem:[%s6110_s1 + $0x70] sm:$0xff]   ;;  %v4398_v28 = vld [vmem:[%s6110_s1 + $0x78] sm:$0xff]   ;;  %v50_v31 = vld [vmem:[%s6109_s0 + $0x8] sm:$0xff] }
   0xa   :  { %4087 = vmatprep.subr.bf16.mxu1 %v4380_v10  ;;  %v4395_v25 = vld [vmem:[%s6110_s1 + $0x30] sm:$0xff]   ;;  %v4399_v29 = vld [vmem:[%s6110_s1 + $0x38] sm:$0xff]   ;;  %v69_v32 = vld [vmem:[%s6109_s0 + $0xa0] sm:$0xff] }
   0xb   :  { %4066 = vmatpush3.bf16.msra.mxu0 %v4379_v9  ;;  %v4396_v26 = vld [vmem:[%s6110_s1 + $0xf0] sm:$0xff]   ;;  %v4400_v30 = vld [vmem:[%s6110_s1 + $0xf8] sm:$0xff]   ;;  %v88_v33 = vpack.c.bf16 %v69_v32, %v50_v31  ;;  %v49_v35 = vld [vmem:[%s6109_s0] sm:$0xff] }
   0xc   :  { %4067 = vmatprep.subr.bf16.mxu0 %v4382_v12  ;;  %v4397_v27 = vld [vmem:[%s6110_s1 + $0xb0] sm:$0xff]   ;;  %v4401_v34 = vld [vmem:[%s6110_s1 + $0xb8] sm:$0xff]   ;;  %v4402_v38 = vld [vmem:[%s6110_s1 + $0x140] sm:$0xff]  }
   0xd   :  { %4088 = vmatpush3.bf16.msra.mxu1 %v4381_v11  ;;  %v68_v36 = vld [vmem:[%s6109_s0 + $0x98] sm:$0xff]  ;;  %1325 = vmatprep.mubr.bf16.mxu0 %v88_v33  ;;  %v71_v40 = vld [vmem:[%s6109_s0 + $0xb0] sm:$0xff]  ;;  %v4403_v42 = vld [vmem:[%s6110_s1 + $0x100] sm:$0xff]  }
   0xe   :  { %4089 = vmatprep.subr.bf16.mxu1 %v4384_v14  ;;  %v87_v37 = vpack.c.bf16 %v68_v36, %v49_v35  ;;  %v52_v39 = vld [vmem:[%s6109_s0 + $0x18] sm:$0xff]  ;;  %v51_v43 = vld [vmem:[%s6109_s0 + $0x10] sm:$0xff]  ;;  %v70_v44 = vld [vmem:[%s6109_s0 + $0xa8] sm:$0xff] }
   0xf   :  { %4068 = vmatpush3.bf16.msra.mxu0 %v4383_v13  ;;  %v90_v41 = vpack.c.bf16 %v71_v40, %v52_v39  ;;  %v89_v45 = vpack.c.bf16 %v70_v44, %v51_v43  ;;  %v4404_v46 = vld [vmem:[%s6110_s1 + $0x1c0] sm:$0xff]   ;;  %v4406_v48 = vld [vmem:[%s6110_s1 + $0x148] sm:$0xff]   ;;  %v4410_v52 = vld [vmem:[%s6110_s1 + $0x150] sm:$0xff]  }
  0x10   :  { %4069 = vmatprep.subr.bf16.mxu0 %v4386_v16  ;;  %v4405_v47 = vld [vmem:[%s6110_s1 + $0x180] sm:$0xff]   ;;  %v4407_v49 = vld [vmem:[%s6110_s1 + $0x108] sm:$0xff]   ;;  %v4411_v53 = vld [vmem:[%s6110_s1 + $0x110] sm:$0xff]  }
  0x11   :  { %4090 = vmatpush3.bf16.msra.mxu1 %v4385_v15  ;;  %1366 = vmatprep.mubr.bf16.mxu1 %v90_v41  ;;  %v4408_v50 = vld [vmem:[%s6110_s1 + $0x1c8] sm:$0xff]   ;;  %v4412_v54 = vld [vmem:[%s6110_s1 + $0x1d0] sm:$0xff]   ;;  %v4414_v56 = vld [vmem:[%s6110_s1 + $0x158] sm:$0xff]  }
  0x12   :  { %4091 = vmatprep.subr.bf16.mxu1 %v4388_v18  ;;  %v4409_v51 = vld [vmem:[%s6110_s1 + $0x188] sm:$0xff]   ;;  %v4413_v55 = vld [vmem:[%s6110_s1 + $0x190] sm:$0xff]   ;;  %v4415_v57 = vld [vmem:[%s6110_s1 + $0x118] sm:$0xff]  }
  0x13   :  { %4070 = vmatpush3.bf16.msra.mxu0 %v4387_v17  ;;  %v4416_v58 = vld [vmem:[%s6110_s1 + $0x1d8] sm:$0xff]   ;;  %v4418_v60 = vld [vmem:[%s6110_s1 + $0x160] sm:$0xff]   ;;  %v4422_v0 = vld [vmem:[%s6110_s1 + $0x168] sm:$0xff]  }
  0x14   :  { %4071 = vmatprep.subr.bf16.mxu0 %v4390_v20  ;;  %v4417_v59 = vld [vmem:[%s6110_s1 + $0x198] sm:$0xff]   ;;  %v4419_v61 = vld [vmem:[%s6110_s1 + $0x120] sm:$0xff]   ;;  %v4423_v1 = vld [vmem:[%s6110_s1 + $0x128] sm:$0xff]  }
  0x15   :  { %4092 = vmatpush3.bf16.msra.mxu1 %v4389_v19  ;;  %v4420_v62 = vld [vmem:[%s6110_s1 + $0x1e0] sm:$0xff]   ;;  %v4424_v2 = vld [vmem:[%s6110_s1 + $0x1e8] sm:$0xff]   ;;  %v4426_v4 = vld [vmem:[%s6110_s1 + $0x170] sm:$0xff]  }
  0x16   :  { %4093 = vmatprep.subr.bf16.mxu1 %v4392_v22  ;;  %v4421_v63 = vld [vmem:[%s6110_s1 + $0x1a0] sm:$0xff]   ;;  %v4425_v3 = vld [vmem:[%s6110_s1 + $0x1a8] sm:$0xff]   ;;  %v4427_v5 = vld [vmem:[%s6110_s1 + $0x130] sm:$0xff]  }
  0x17   :  { %4072 = vmatpush3.bf16.msra.mxu0 %v4391_v21  ;;  %v4428_v6 = vld [vmem:[%s6110_s1 + $0x1f0] sm:$0xff]   ;;  %v4430_v8 = vld [vmem:[%s6110_s1 + $0x178] sm:$0xff]   ;;  %v54_v11 = vld [vmem:[%s6109_s0 + $0x28] sm:$0xff] }
  0x18   :  { %4073 = vmatprep.subr.bf16.mxu0 %v4394_v24  ;;  %v4429_v7 = vld [vmem:[%s6110_s1 + $0x1b0] sm:$0xff]   ;;  %v4431_v9 = vld [vmem:[%s6110_s1 + $0x138] sm:$0xff]   ;;  %v73_v12 = vld [vmem:[%s6109_s0 + $0xc0] sm:$0xff] }
  0x19   :  { %4094 = vmatpush3.bf16.msra.mxu1 %v4393_v23  ;;  %v4432_v10 = vld [vmem:[%s6110_s1 + $0x1f8] sm:$0xff]   ;;  %v92_v13 = vpack.c.bf16 %v73_v12, %v54_v11  ;;  %v53_v15 = vld [vmem:[%s6109_s0 + $0x20] sm:$0xff]  ;;  %v75_v20 = vld [vmem:[%s6109_s0 + $0xd0] sm:$0xff] }
  0x1a   :  { %4095 = vmatprep.subr.bf16.mxu1 %v4396_v26  ;;  %v4433_v14 = vld [vmem:[%s6110_s1 + $0x1b8] sm:$0xff]   ;;  %v4434_v18 = vld [vmem:[%s6110_s1 + $0x240] sm:$0xff]   ;;  %v55_v23 = vld [vmem:[%s6109_s0 + $0x30] sm:$0xff] }
  0x1b   :  { %4074 = vmatpush3.bf16.msra.mxu0 %v4395_v25  ;;  %v72_v16 = vld [vmem:[%s6109_s0 + $0xb8] sm:$0xff]  ;;  %v4435_v22 = vld [vmem:[%s6110_s1 + $0x200] sm:$0xff]   ;;  %v74_v24 = vld [vmem:[%s6109_s0 + $0xc8] sm:$0xff] }
  0x1c   :  { %4075 = vmatprep.subr.bf16.mxu0 %v4398_v28  ;;  %v91_v17 = vpack.c.bf16 %v72_v16, %v53_v15  ;;  %v56_v19 = vld [vmem:[%s6109_s0 + $0x38] sm:$0xff]  ;;  %v93_v25 = vpack.c.bf16 %v74_v24, %v55_v23  ;;  %v4436_v26 = vld [vmem:[%s6110_s1 + $0x2c0] sm:$0xff]   ;;  %v4438_v28 = vld [vmem:[%s6110_s1 + $0x248] sm:$0xff]  }
  0x1d   :  { %4096 = vmatpush3.bf16.msra.mxu1 %v4397_v27  ;;  %v94_v21 = vpack.c.bf16 %v75_v20, %v56_v19  ;;  %v4437_v27 = vld [vmem:[%s6110_s1 + $0x280] sm:$0xff]   ;;  %v4441_v31 = vld [vmem:[%s6110_s1 + $0x288] sm:$0xff]   ;;  %v4442_v32 = vld [vmem:[%s6110_s1 + $0x250] sm:$0xff]  }
  0x1e   :  { %4097 = vmatprep.subr.bf16.mxu1 %v4400_v30  ;;  %v4440_v30 = vld [vmem:[%s6110_s1 + $0x2c8] sm:$0xff]   ;;  %v4443_v33 = vld [vmem:[%s6110_s1 + $0x210] sm:$0xff]   ;;  %v4446_v36 = vld [vmem:[%s6110_s1 + $0x258] sm:$0xff]  }
  0x1f   :  { %4076 = vmatpush3.bf16.msra.mxu0 %v4399_v29  ;;  %v4439_v29 = vld [vmem:[%s6110_s1 + $0x208] sm:$0xff]   ;;  %v4445_v35 = vld [vmem:[%s6110_s1 + $0x290] sm:$0xff]   ;;  %v4449_v39 = vld [vmem:[%s6110_s1 + $0x298] sm:$0xff]  }
  0x20   :  { %4105 = vmatprep.subr.bf16.mxu0 %v4402_v38  ;;  %v4448_v38 = vld [vmem:[%s6110_s1 + $0x2d8] sm:$0xff]   ;;  %v4450_v40 = vld [vmem:[%s6110_s1 + $0x260] sm:$0xff]   ;;  %v4454_v44 = vld [vmem:[%s6110_s1 + $0x268] sm:$0xff]  }
  0x21   :  { %4098 = vmatpush3.bf16.msra.mxu1 %v4401_v34  ;;  %v4444_v34 = vld [vmem:[%s6110_s1 + $0x2d0] sm:$0xff]   ;;  %v4451_v41 = vld [vmem:[%s6110_s1 + $0x220] sm:$0xff]   ;;  %v4473_v11 = vld [vmem:[%s6110_s1 + $0x388] sm:$0xff]  }
  0x22   :  { %1326 = vmatmul.mubr.bf16.vlgmr.msra.gmra.mrb[0].mxu0 %v87_v37  ;;  %4127 = vmatprep.subr.bf16.mxu1 %v4404_v46  ;;  %v4447_v37 = vld [vmem:[%s6110_s1 + $0x218] sm:$0xff]   ;;  %v4453_v43 = vld [vmem:[%s6110_s1 + $0x2a0] sm:$0xff]   ;;  %v4456_v46 = vld [vmem:[%s6110_s1 + $0x2e8] sm:$0xff]  }
  0x23   :  { %4106 = vmatpush3.bf16.msra.mxu0 %v4403_v42  ;;  %1407 = vmatprep.mubr.bf16.mxu0 %v92_v13  ;;  %v4452_v42 = vld [vmem:[%s6110_s1 + $0x2e0] sm:$0xff]   ;;  %v4474_v12 = vld [vmem:[%s6110_s1 + $0x350] sm:$0xff]   ;;  %v4478_v16 = vld [vmem:[%s6110_s1 + $0x358] sm:$0xff]  }
  0x24   :  { %1367 = vmatmul.mubr.bf16.vlgmr.msra.gmra.mrb[0].mxu1 %v89_v45  ;;  %4107 = vmatprep.subr.bf16.mxu0 %v4406_v48  ;;  %v4455_v45 = vld [vmem:[%s6110_s1 + $0x228] sm:$0xff]   ;;  %v4458_v48 = vld [vmem:[%s6110_s1 + $0x270] sm:$0xff]   ;;  %v4481_v19 = vld [vmem:[%s6110_s1 + $0x398] sm:$0xff]  }
  0x25   :  { %4128 = vmatpush3.bf16.msra.mxu1 %v4405_v47  ;;  %1448 = vmatprep.mubr.bf16.mxu1 %v94_v21  ;;  %v4457_v47 = vld [vmem:[%s6110_s1 + $0x2a8] sm:$0xff]   ;;  %v4475_v13 = vld [vmem:[%s6110_s1 + $0x310] sm:$0xff]   ;;  %v4482_v20 = vld [vmem:[%s6110_s1 + $0x360] sm:$0xff]  }
  0x26   :  { %4129 = vmatprep.subr.bf16.mxu1 %v4408_v50  ;;  %v4460_v50 = vld [vmem:[%s6110_s1 + $0x2f0] sm:$0xff]   ;;  %v4483_v21 = vld [vmem:[%s6110_s1 + $0x320] sm:$0xff]   ;;  %v4486_v24 = vld [vmem:[%s6110_s1 + $0x368] sm:$0xff]  }
  0x27   :  { %4108 = vmatpush3.bf16.msra.mxu0 %v4407_v49  ;;  %v4459_v49 = vld [vmem:[%s6110_s1 + $0x230] sm:$0xff]   ;;  %v4485_v23 = vld [vmem:[%s6110_s1 + $0x3a0] sm:$0xff]  }
  0x28   :  { %4109 = vmatprep.subr.bf16.mxu0 %v4410_v52  ;;  %v4462_v52 = vld [vmem:[%s6110_s1 + $0x278] sm:$0xff]   ;;  %v4477_v15 = vld [vmem:[%s6110_s1 + $0x390] sm:$0xff]  }
  0x29   :  { %4130 = vmatpush3.bf16.msra.mxu1 %v4409_v51  ;;  %v4461_v51 = vld [vmem:[%s6110_s1 + $0x2b0] sm:$0xff]  }
  0x2a   :  { %4131 = vmatprep.subr.bf16.mxu1 %v4412_v54  ;;  %v4464_v54 = vld [vmem:[%s6110_s1 + $0x2f8] sm:$0xff]  }
  0x2b   :  { %4110 = vmatpush3.bf16.msra.mxu0 %v4411_v53  ;;  %v4463_v53 = vld [vmem:[%s6110_s1 + $0x238] sm:$0xff]  }
  0x2c   :  { %4111 = vmatprep.subr.bf16.mxu0 %v4414_v56  ;;  %v77_v56 = vld [vmem:[%s6109_s0 + $0xe0] sm:$0xff] }
  0x2d   :  { %4132 = vmatpush3.bf16.msra.mxu1 %v4413_v55  ;;  %v58_v55 = vld [vmem:[%s6109_s0 + $0x48] sm:$0xff] }
  0x2e   :  { %4133 = vmatprep.subr.bf16.mxu1 %v4416_v58  ;;  %v4465_v58 = vld [vmem:[%s6110_s1 + $0x2b8] sm:$0xff]  }
  0x2f   :  { %4112 = vmatpush3.bf16.msra.mxu0 %v4415_v57  ;;  %v96_v57 = vpack.c.bf16 %v77_v56, %v58_v55  ;;  %v4504_v55 = vld [vmem:[%s6110_s1 + $0x458] sm:$0xff]  }
  0x30   :  { %4113 = vmatprep.subr.bf16.mxu0 %v4418_v60  ;;  %v76_v60 = vld [vmem:[%s6109_s0 + $0xd8] sm:$0xff] }
  0x31   :  { %4134 = vmatpush3.bf16.msra.mxu1 %v4417_v59  ;;  %v57_v59 = vld [vmem:[%s6109_s0 + $0x40] sm:$0xff]  ;;  %v4505_v56 = vld [vmem:[%s6110_s1 + $0x418] sm:$0xff]  }
  0x32   :  { %4135 = vmatprep.subr.bf16.mxu1 %v4420_v62  ;;  %v4466_v62 = vld [vmem:[%s6110_s1 + $0x340] sm:$0xff]  }
  0x33   :  { %4114 = vmatpush3.bf16.msra.mxu0 %v4419_v61  ;;  %v95_v61 = vpack.c.bf16 %v76_v60, %v57_v59  ;;  %v4507_v59 = vld [vmem:[%s6110_s1 + $0x420] sm:$0xff]   ;;  %v4508_v60 = vld [vmem:[%s6110_s1 + $0x468] sm:$0xff]  }
  0x34   :  { %4115 = vmatprep.subr.bf16.mxu0 %v4422_v0  ;;  %v79_v0 = vld [vmem:[%s6109_s0 + $0xf0] sm:$0xff] }
  0x35   :  { %4136 = vmatpush3.bf16.msra.mxu1 %v4421_v63  ;;  %v60_v63 = vld [vmem:[%s6109_s0 + $0x58] sm:$0xff] }
  0x36   :  { %4137 = vmatprep.subr.bf16.mxu1 %v4424_v2  ;;  %v4467_v2 = vld [vmem:[%s6110_s1 + $0x300] sm:$0xff]  }
  0x37   :  { %4116 = vmatpush3.bf16.msra.mxu0 %v4423_v1  ;;  %v98_v1 = vpack.c.bf16 %v79_v0, %v60_v63  ;;  %v66_v63 = vld [vmem:[%s6109_s0 + $0x88] sm:$0xff]  ;;  %v85_v0 = vld [vmem:[%s6109_s0 + $0x120] sm:$0xff] }
  0x38   :  { %4117 = vmatprep.subr.bf16.mxu0 %v4426_v4  ;;  %v78_v4 = vld [vmem:[%s6109_s0 + $0xe8] sm:$0xff] }
  0x39   :  { %4138 = vmatpush3.bf16.msra.mxu1 %v4425_v3  ;;  %v59_v3 = vld [vmem:[%s6109_s0 + $0x50] sm:$0xff] }
  0x3a   :  { %4139 = vmatprep.subr.bf16.mxu1 %v4428_v6  ;;  %v4468_v6 = vld [vmem:[%s6110_s1 + $0x3c0] sm:$0xff]  }
  0x3b   :  { %4118 = vmatpush3.bf16.msra.mxu0 %v4427_v5  ;;  %v97_v5 = vpack.c.bf16 %v78_v4, %v59_v3  ;;  %v4516_v3 = vld [vmem:[%s6110_s1 + $0x490] sm:$0xff]  }
  0x3c   :  { %4119 = vmatprep.subr.bf16.mxu0 %v4430_v8  ;;  %v4470_v8 = vld [vmem:[%s6110_s1 + $0x348] sm:$0xff]   ;;  %v4512_v4 = vld [vmem:[%s6110_s1 + $0x430] sm:$0xff]  }
  0x3d   :  { %4140 = vmatpush3.bf16.msra.mxu1 %v4429_v7  ;;  %v4469_v7 = vld [vmem:[%s6110_s1 + $0x380] sm:$0xff]  }
  0x3e   :  { %4141 = vmatprep.subr.bf16.mxu1 %v4432_v10  ;;  %v4472_v10 = vld [vmem:[%s6110_s1 + $0x3c8] sm:$0xff]  }
  0x3f   :  { %4120 = vmatpush3.bf16.msra.mxu0 %v4431_v9  ;;  %v4471_v9 = vld [vmem:[%s6110_s1 + $0x308] sm:$0xff]  }
  0x40   :  { %4149 = vmatprep.subr.bf16.mxu0 %v4434_v18  ;;  %v4480_v18 = vld [vmem:[%s6110_s1 + $0x3d8] sm:$0xff]  }
  0x41   :  { %4142 = vmatpush3.bf16.msra.mxu1 %v4433_v14  ;;  %v4476_v14 = vld [vmem:[%s6110_s1 + $0x3d0] sm:$0xff]  }
  0x42   :  { %1408 = vmatmul.mubr.bf16.vlgmr.msra.gmra.mrb[4].mxu0 %v91_v17  ;;  %4171 = vmatprep.subr.bf16.mxu1 %v4436_v26  ;;  %v4479_v17 = vld [vmem:[%s6110_s1 + $0x318] sm:$0xff]   ;;  %v4488_v26 = vld [vmem:[%s6110_s1 + $0x3e8] sm:$0xff]  }
  0x43   :  { %4150 = vmatpush3.bf16.msra.mxu0 %v4435_v22  ;;  %1489 = vmatprep.mubr.bf16.mxu0 %v96_v57  ;;  %v4484_v22 = vld [vmem:[%s6110_s1 + $0x3e0] sm:$0xff]  }
  0x44   :  { %1449 = vmatmul.mubr.bf16.vlgmr.msra.gmra.mrb[4].mxu1 %v93_v25  ;;  %4151 = vmatprep.subr.bf16.mxu0 %v4438_v28  ;;  %v4487_v25 = vld [vmem:[%s6110_s1 + $0x328] sm:$0xff]   ;;  %v4490_v28 = vld [vmem:[%s6110_s1 + $0x370] sm:$0xff]   ;;  %v4506_v57 = vld [vmem:[%s6110_s1 + $0x460] sm:$0xff]  }
  0x45   :  { %4172 = vmatpush3.bf16.msra.mxu1 %v4437_v27  ;;  %1530 = vmatprep.mubr.bf16.mxu1 %v98_v1  ;;  %v4489_v27 = vld [vmem:[%s6110_s1 + $0x3a8] sm:$0xff]   ;;  %v4511_v1 = vld [vmem:[%s6110_s1 + $0x470] sm:$0xff]  }
  0x46   :  { %4173 = vmatprep.subr.bf16.mxu1 %v4440_v30  ;;  %v4492_v30 = vld [vmem:[%s6110_s1 + $0x3f0] sm:$0xff]  }
  0x47   :  { %4152 = vmatpush3.bf16.msra.mxu0 %v4439_v29  ;;  %v4491_v29 = vld [vmem:[%s6110_s1 + $0x330] sm:$0xff]  }
  0x48   :  { %4153 = vmatprep.subr.bf16.mxu0 %v4442_v32  ;;  %v4494_v32 = vld [vmem:[%s6110_s1 + $0x378] sm:$0xff]  }
  0x49   :  { %4174 = vmatpush3.bf16.msra.mxu1 %v4441_v31  ;;  %v4493_v31 = vld [vmem:[%s6110_s1 + $0x3b0] sm:$0xff]  }
  0x4a   :  { %4175 = vmatprep.subr.bf16.mxu1 %v4444_v34  ;;  %v4496_v34 = vld [vmem:[%s6110_s1 + $0x3f8] sm:$0xff]  }
  0x4b   :  { %4154 = vmatpush3.bf16.msra.mxu0 %v4443_v33  ;;  %v4495_v33 = vld [vmem:[%s6110_s1 + $0x338] sm:$0xff]  }
  0x4c   :  { %4155 = vmatprep.subr.bf16.mxu0 %v4446_v36  ;;  %v81_v36 = vld [vmem:[%s6109_s0 + $0x100] sm:$0xff] }
  0x4d   :  { %4176 = vmatpush3.bf16.msra.mxu1 %v4445_v35  ;;  %v62_v35 = vld [vmem:[%s6109_s0 + $0x68] sm:$0xff] }
  0x4e   :  { %4177 = vmatprep.subr.bf16.mxu1 %v4448_v38  ;;  %v4497_v38 = vld [vmem:[%s6110_s1 + $0x3b8] sm:$0xff]  }
  0x4f   :  { %4156 = vmatpush3.bf16.msra.mxu0 %v4447_v37  ;;  %v100_v37 = vpack.c.bf16 %v81_v36, %v62_v35 }
  0x50   :  { %4157 = vmatprep.subr.bf16.mxu0 %v4450_v40  ;;  %v80_v40 = vld [vmem:[%s6109_s0 + $0xf8] sm:$0xff] }
  0x51   :  { %4178 = vmatpush3.bf16.msra.mxu1 %v4449_v39  ;;  %v61_v39 = vld [vmem:[%s6109_s0 + $0x60] sm:$0xff] }
  0x52   :  { %4179 = vmatprep.subr.bf16.mxu1 %v4452_v42  ;;  %v4498_v42 = vld [vmem:[%s6110_s1 + $0x440] sm:$0xff]  }
  0x53   :  { %4158 = vmatpush3.bf16.msra.mxu0 %v4451_v41  ;;  %v99_v41 = vpack.c.bf16 %v80_v40, %v61_v39 }
  0x54   :  { %4159 = vmatprep.subr.bf16.mxu0 %v4454_v44  ;;  %v83_v44 = vld [vmem:[%s6109_s0 + $0x110] sm:$0xff] }
  0x55   :  { %4180 = vmatpush3.bf16.msra.mxu1 %v4453_v43  ;;  %v64_v43 = vld [vmem:[%s6109_s0 + $0x78] sm:$0xff] }
  0x56   :  { %4181 = vmatprep.subr.bf16.mxu1 %v4456_v46  ;;  %v4499_v46 = vld [vmem:[%s6110_s1 + $0x400] sm:$0xff]  }
  0x57   :  { %4160 = vmatpush3.bf16.msra.mxu0 %v4455_v45  ;;  %v102_v45 = vpack.c.bf16 %v83_v44, %v64_v43 }
  0x58   :  { %4161 = vmatprep.subr.bf16.mxu0 %v4458_v48  ;;  %v63_v48 = vld [vmem:[%s6109_s0 + $0x70] sm:$0xff] }
  0x59   :  { %4182 = vmatpush3.bf16.msra.mxu1 %v4457_v47  ;;  %v4817_v47 = vmov 0.0  }
  0x5a   :  { %4183 = vmatprep.subr.bf16.mxu1 %v4460_v50 }
  0x5b   :  { %4162 = vmatpush3.bf16.msra.mxu0 %v4459_v49  ;;  %v82_v49 = vld [vmem:[%s6109_s0 + $0x108] sm:$0xff] }
  0x5c   :  { %4163 = vmatprep.subr.bf16.mxu0 %v4462_v52  ;;  %v101_v50 = vpack.c.bf16 %v82_v49, %v63_v48  ;;  %v4501_v52 = vld [vmem:[%s6110_s1 + $0x408] sm:$0xff]  }
  0x5d   :  { %4184 = vmatpush3.bf16.msra.mxu1 %v4461_v51  ;;  %v4500_v51 = vld [vmem:[%s6110_s1 + $0x448] sm:$0xff]  }
  0x5e   :  { %4185 = vmatprep.subr.bf16.mxu1 %v4464_v54  ;;  %v4503_v54 = vld [vmem:[%s6110_s1 + $0x410] sm:$0xff]  }
  0x5f   :  { %4164 = vmatpush3.bf16.msra.mxu0 %v4463_v53  ;;  %v4502_v53 = vld [vmem:[%s6110_s1 + $0x450] sm:$0xff]  }
  0x60   :  { %4193 = vmatprep.subr.bf16.mxu0 %v4466_v62  ;;  %v4509_v62 = vld [vmem:[%s6110_s1 + $0x428] sm:$0xff]  }
  0x61   :  { %4186 = vmatpush3.bf16.msra.mxu1 %v4465_v58  ;;  %v4510_v58 = vld [vmem:[%s6110_s1 + $0x480] sm:$0xff]  }
  0x62   :  { %1490 = vmatmul.mubr.bf16.vlgmr.msra.gmra.mrb[8].mxu0 %v95_v61  ;;  %4215 = vmatprep.subr.bf16.mxu1 %v4468_v6  ;;  %v4513_v61 = vld [vmem:[%s6110_s1 + $0x488] sm:$0xff]  }
  0x63   :  { %4194 = vmatpush3.bf16.msra.mxu0 %v4467_v2  ;;  %1571 = vmatprep.mubr.bf16.mxu0 %v100_v37  ;;  %v104_v2 = vpack.c.bf16 %v85_v0, %v66_v63  ;;  %v86_v6 = vld [vmem:[%s6109_s0 + $0x128] sm:$0xff] }
  0x64   :  { %1531 = vmatmul.mubr.bf16.vlgmr.msra.gmra.mrb[8].mxu1 %v97_v5  ;;  %4195 = vmatprep.subr.bf16.mxu0 %v4470_v8  ;;  %v67_v5 = vld [vmem:[%s6109_s0 + $0x90] sm:$0xff] }
  0x65   :  { %4216 = vmatpush3.bf16.msra.mxu1 %v4469_v7  ;;  %1612 = vmatprep.mubr.bf16.mxu1 %v102_v45  ;;  %v4514_v7 = vld [vmem:[%s6110_s1 + $0x478] sm:$0xff]   ;;  %v105_v8 = vpack.c.bf16 %v86_v6, %v67_v5 }
  0x66   :  { %4217 = vmatprep.subr.bf16.mxu1 %v4472_v10  ;;  %v65_v10 = vld [vmem:[%s6109_s0 + $0x80] sm:$0xff] }
  0x67   :  { %4196 = vmatpush3.bf16.msra.mxu0 %v4471_v9  ;;  %v4515_v9 = vld [vmem:[%s6110_s1 + $0x438] sm:$0xff]  }
  0x68   :  { %4197 = vmatprep.subr.bf16.mxu0 %v4474_v12 }
  0x69   :  { %4218 = vmatpush3.bf16.msra.mxu1 %v4473_v11  ;;  %v84_v11 = vld [vmem:[%s6109_s0 + $0x118] sm:$0xff] }
  0x6a   :  { %4219 = vmatprep.subr.bf16.mxu1 %v4476_v14  ;;  %v103_v12 = vpack.c.bf16 %v84_v11, %v65_v10 }
  0x6b   :  { %4198 = vmatpush3.bf16.msra.mxu0 %v4475_v13 }
  0x6c   :  { %4199 = vmatprep.subr.bf16.mxu0 %v4478_v16 }
  0x6d   :  { %4220 = vmatpush3.bf16.msra.mxu1 %v4477_v15 }
  0x6e   :  { %4221 = vmatprep.subr.bf16.mxu1 %v4480_v18 }
  0x6f   :  { %4200 = vmatpush3.bf16.msra.mxu0 %v4479_v17 }
  0x70   :  { %4201 = vmatprep.subr.bf16.mxu0 %v4482_v20 }
  0x71   :  { %4222 = vmatpush3.bf16.msra.mxu1 %v4481_v19 }
  0x72   :  { %4223 = vmatprep.subr.bf16.mxu1 %v4484_v22 }
  0x73   :  { %4202 = vmatpush3.bf16.msra.mxu0 %v4483_v21 }
  0x74   :  { %4203 = vmatprep.subr.bf16.mxu0 %v4486_v24 }
  0x75   :  { %4224 = vmatpush3.bf16.msra.mxu1 %v4485_v23 }
  0x76   :  { %4225 = vmatprep.subr.bf16.mxu1 %v4488_v26 }
  0x77   :  { %4204 = vmatpush3.bf16.msra.mxu0 %v4487_v25 }
  0x78   :  { %4205 = vmatprep.subr.bf16.mxu0 %v4490_v28 }
  0x79   :  { %4226 = vmatpush3.bf16.msra.mxu1 %v4489_v27 }
  0x7a   :  { %4227 = vmatprep.subr.bf16.mxu1 %v4492_v30 }
  0x7b   :  { %4206 = vmatpush3.bf16.msra.mxu0 %v4491_v29 }
  0x7c   :  { %4207 = vmatprep.subr.bf16.mxu0 %v4494_v32 }
  0x7d   :  { %4228 = vmatpush3.bf16.msra.mxu1 %v4493_v31 }
  0x7e   :  { %4229 = vmatprep.subr.bf16.mxu1 %v4496_v34 }
  0x7f   :  { %4208 = vmatpush3.bf16.msra.mxu0 %v4495_v33 }
  0x80   :  { %4237 = vmatprep.subr.bf16.mxu0 %v4498_v42 }
  0x81   :  { %4230 = vmatpush3.bf16.msra.mxu1 %v4497_v38 }
  0x82   :  { %4290 = vmatprep.subr.bf16.mxu1 %v4817_v47  ;;  %1572 = vmatmul.mubr.bf16.vlgmr.msra.gmra.mrb[12].mxu0 %v99_v41 }
  0x83   :  { %4238 = vmatpush3.bf16.msra.mxu0 %v4499_v46  ;;  %1653 = vmatprep.mubr.bf16.mxu0 %v104_v2 }
  0x84   :  { %1613 = vmatmul.mubr.bf16.vlgmr.msra.gmra.mrb[12].mxu1 %v101_v50  ;;  %4239 = vmatprep.subr.bf16.mxu0 %v4500_v51 }
  0x85   :  { %4296 = vmatprep.mubr.msk.bf16.mxu1 %vm4818_vm0, %v4817_v47  ;;  %4291 = vmatpush3.bf16.msra.mxu1 %v4510_v58 }
  0x86   :  { %4292 = vmatprep.subr.bf16.mxu1 %v4817_v47 }
  0x87   :  { %4240 = vmatpush3.bf16.msra.mxu0 %v4501_v52 }
  0x88   :  { %4241 = vmatprep.subr.bf16.mxu0 %v4502_v53 }
  0x89   :  { %4293 = vmatpush3.bf16.msra.mxu1 %v4513_v61 }
  0x8a   :  { %4294 = vmatprep.subr.bf16.mxu1 %v4817_v47 }
  0x8b   :  { %4242 = vmatpush3.bf16.msra.mxu0 %v4503_v54 }
  0x8c   :  { %4243 = vmatprep.subr.bf16.mxu0 %v4504_v55 }
  0x8d   :  { %4295 = vmatpush3.bf16.msra.mxu1 %v4516_v3 }
  0x8e   :  { %4300 = vmatprep.subr.bf16.mxu1 %v4817_v47 }
  0x8f   :  { %4244 = vmatpush3.bf16.msra.mxu0 %v4505_v56 }
  0x90   :  { %4245 = vmatprep.subr.bf16.mxu0 %v4506_v57  ;;  %4297 = vmatmul.mubr.msk.bf16.vlgmr.msra.gmra.mrb[16].mxu1 %vm1289_vm1, %v105_v8 }
  0x91   :  { %4316 = vmatprep.mubr.msk.bf16.mxu1 %vm4818_vm0, %v4817_v47 }
  0x93   :  { %4246 = vmatpush3.bf16.msra.mxu0 %v4507_v59 }
  0x94   :  { %4247 = vmatprep.subr.bf16.mxu0 %v4508_v60 }
  0x97   :  { %4248 = vmatpush3.bf16.msra.mxu0 %v4509_v62 }
  0x98   :  { %4249 = vmatprep.subr.bf16.mxu0 %v4511_v1 }
  0x9b   :  { %4250 = vmatpush3.bf16.msra.mxu0 %v4512_v4 }
  0x9c   :  { %4251 = vmatprep.subr.bf16.mxu0 %v4514_v7 }
  0x9f   :  { %4252 = vmatpush3.bf16.msra.mxu0 %v4515_v9 }
  0xa0   :  { %4320 = vmatprep.subr.bf16.mxu0 %v4817_v47 }
  0xa2   :  { %1654 = vmatmul.mubr.bf16.vlgmr.msra.gmra.mrb[16].mxu0 %v103_v12 }
  0xa3   :  { %4324 = vmatprep.mubr.msk.bf16.mxu0 %vm4818_vm0, %v4817_v47 }
  0xa4   :  { %20 = vsyncpa [#allocation3], 0  ;;  %v4517_v13 = vld [vmem:[%s6112_s3] sm:$0xff]   ;;  %v4518_v14 = vld [vmem:[%s6112_s3 + $0x8] sm:$0xff]   ;;  %vm1844_vm2 = vcmask 261120   ;;  %vm1889_vm3 = vcmask 15360  }
  0xa5   :  { %4301 = vmatpush3.bf16.msra.mxu1 %v4517_v13  ;;  %v4519_v15 = vld [vmem:[%s6112_s3 + $0x10] sm:$0xff]   ;;  %v4520_v16 = vld [vmem:[%s6112_s3 + $0x18] sm:$0xff]   ;;  %v4521_v17 = vld [vmem:[%s6112_s3 + $0x20] sm:$0xff]   ;;  %vm3687_vm4 = vcmask 388096  }
  0xa6   :  { %4302 = vmatprep.subr.bf16.mxu1 %v4817_v47  ;;  %v3719_v19 = vld [vmem:[%s6111_s2] ss:$0 sm:$0xff]  ;;  %v4522_v35 = vld [vmem:[%s6112_s3 + $0x28] sm:$0xff]   ;;  %v4523_v36 = vld [vmem:[%s6112_s3 + $0x30] sm:$0xff]  }
  0xa7   :  { %v4524_v37 = vld [vmem:[%s6112_s3 + $0x38] sm:$0xff]  }
  0xa9   :  { %4303 = vmatpush3.bf16.msra.mxu1 %v4518_v14 }
  0xaa   :  { %4304 = vmatprep.subr.bf16.mxu1 %v4817_v47 }
  0xad   :  { %4305 = vmatpush3.bf16.msra.mxu1 %v4519_v15 }
  0xae   :  { %4306 = vmatprep.subr.bf16.mxu1 %v4817_v47 }
  0xb1   :  { %4307 = vmatpush3.bf16.msra.mxu1 %v4520_v16 }
  0xb2   :  { %4308 = vmatprep.subr.bf16.mxu1 %v4817_v47 }
  0xb5   :  { %4309 = vmatpush3.bf16.msra.mxu1 %v4521_v17 }
  0xb6   :  { %4310 = vmatprep.subr.bf16.mxu1 %v4817_v47 }
  0xb9   :  { %4311 = vmatpush3.bf16.msra.mxu1 %v4522_v35 }
  0xba   :  { %4312 = vmatprep.subr.bf16.mxu1 %v4817_v47 }
  0xbd   :  { %4313 = vmatpush3.bf16.msra.mxu1 %v4523_v36 }
  0xbe   :  { %4314 = vmatprep.subr.bf16.mxu1 %v4817_v47 }
  0xc1   :  { %4315 = vmatpush3.bf16.msra.mxu1 %v4524_v37 }
  0xc2   :  { %4336 = vmatprep.subr.bf16.mxu1 %v4817_v47 }
  0xf5   :  { %v4077_v18 = vpop.f32.mrb[0].mxu0 }
  0xf6   :  { %v4078_v20 = vpop.f32.mrb[1].mxu0 }
  0xf7   :  { %v4079_v21 = vadd.f32 %v4078_v20, %v4077_v18  ;;  %v4080_v22 = vpop.f32.mrb[2].mxu0  ;;  %v4099_v23 = vpop.f32.mrb[0].mxu1 }
  0xf8   :  { %v4081_v24 = vpop.f32.mrb[3].mxu0  ;;  %v4100_v27 = vpop.f32.mrb[1].mxu1 }
  0xf9   :  { %v1328_v25 = vadd.f32 %v4079_v21, %v3719_v19  ;;  %v4082_v26 = vadd.f32 %v4081_v24, %v4080_v22  ;;  %v4101_v28 = vadd.f32 %v4100_v27, %v4099_v23  ;;  %v4102_v29 = vpop.f32.mrb[2].mxu1 }
  0xfa   :  { %v4103_v31 = vpop.f32.mrb[3].mxu1 }
  0xfb   :  { %v1331_v30 = vadd.f32 %v4082_v26, %v3719_v19  ;;  %v1369_v32 = vadd.f32 %v4101_v28, %v1328_v25  ;;  %v4104_v33 = vadd.f32 %v4103_v31, %v4102_v29 }
  0xfd   :  { %v1372_v34 = vadd.f32 %v4104_v33, %v1331_v30 }
 0x115   :  { %v4121_v38 = vpop.f32.mrb[4].mxu0 }
 0x116   :  { %v4122_v39 = vpop.f32.mrb[5].mxu0 }
 0x117   :  { %v4123_v40 = vadd.f32 %v4122_v39, %v4121_v38  ;;  %v4124_v41 = vpop.f32.mrb[6].mxu0  ;;  %v4143_v44 = vpop.f32.mrb[4].mxu1 }
 0x118   :  { %v4125_v42 = vpop.f32.mrb[7].mxu0  ;;  %v4144_v46 = vpop.f32.mrb[5].mxu1 }
 0x119   :  { %v1410_v43 = vadd.f32 %v4123_v40, %v1369_v32  ;;  %v4126_v45 = vadd.f32 %v4125_v42, %v4124_v41  ;;  %v4145_v49 = vadd.f32 %v4144_v46, %v4143_v44  ;;  %v4146_v50 = vpop.f32.mrb[6].mxu1  ;;  %v4525_v40 = vld [vmem:[%s6114_s5] sm:$0xff]   ;;  %v4526_v41 = vld [vmem:[%s6114_s5 + $0x8] sm:$0xff]  }
 0x11a   :  { %v4147_v51 = vpop.f32.mrb[7].mxu1  ;;  %4321 = vmatpush3.bf16.msra.mxu0 %v4525_v40  ;;  %v3868_v42 = vld [vmem:[%s6113_s4] ss:$0 sm:$0xff]  ;;  %v4573_v40 = vld [vmem:[%s6120_s11 + $0x428] ss:$76 sps:$4 sm:$0xff]  }
 0x11b   :  { %v1413_v48 = vadd.f32 %v4126_v45, %v1372_v34  ;;  %v1451_v52 = vadd.f32 %v4145_v49, %v1410_v43  ;;  %v4148_v53 = vadd.f32 %v4147_v51, %v4146_v50  ;;  %4322 = vmatprep.subr.bf16.mxu0 %v4817_v47 }
 0x11d   :  { %v1454_v54 = vadd.f32 %v4148_v53, %v1413_v48 }
 0x11e   :  { %4323 = vmatpush3.bf16.msra.mxu0 %v4526_v41  ;;  %v4576_v41 = vld [vmem:[%s6120_s11 + $0x430] ss:$76 sps:$4 sm:$0xff]  }
 0x11f   :  { %4328 = vmatprep.subr.bf16.mxu0 %v4817_v47 }
 0x135   :  { %v4165_v55 = vpop.f32.mrb[8].mxu0 }
 0x136   :  { %v4166_v56 = vpop.f32.mrb[9].mxu0 }
 0x137   :  { %v4167_v57 = vadd.f32 %v4166_v56, %v4165_v55  ;;  %v4168_v58 = vpop.f32.mrb[10].mxu0  ;;  %v4187_v59 = vpop.f32.mrb[8].mxu1  ;;  %v4529_v55 = vld [vmem:[%s6118_s9] sm:$0xff]   ;;  %v4530_v56 = vld [vmem:[%s6118_s9 + $0x8] sm:$0xff]  }
 0x138   :  { %v4169_v60 = vpop.f32.mrb[11].mxu0  ;;  %v4188_v63 = vpop.f32.mrb[9].mxu1 }
 0x139   :  { %v1492_v61 = vadd.f32 %v4167_v57, %v1451_v52  ;;  %v4170_v62 = vadd.f32 %v4169_v60, %v4168_v58  ;;  %v4189_v0 = vadd.f32 %v4188_v63, %v4187_v59  ;;  %v4190_v1 = vpop.f32.mrb[10].mxu1  ;;  %v4527_v52 = vld [vmem:[%s6116_s7] sm:$0xff]   ;;  %v4536_v59 = vld [vmem:[%s6120_s11 + $0xc] ss:$76 sps:$4 sm:$0xff]   ;;  %v4539_v60 = vld [vmem:[%s6120_s11 + $0x9c] ss:$76 sps:$4 sm:$0xff]  }
 0x13a   :  { %v4191_v3 = vpop.f32.mrb[11].mxu1  ;;  %v4531_v57 = vld [vmem:[%s6120_s11] ss:$76 sps:$4 sm:$0xff]   ;;  %v4533_v58 = vld [vmem:[%s6120_s11 + $0x4] ss:$76 sps:$4 sm:$0xff]  }
 0x13b   :  { %v1495_v2 = vadd.f32 %v4170_v62, %v1454_v54  ;;  %v1533_v4 = vadd.f32 %v4189_v0, %v1492_v61  ;;  %v4192_v5 = vadd.f32 %v4191_v3, %v4190_v1  ;;  %v4528_v54 = vld [vmem:[%s6116_s7 + $0x8] sm:$0xff]   ;;  %v4537_v61 = vld [vmem:[%s6120_s11 + $0x98] ss:$76 sps:$4 sm:$0xff]   ;;  %v4545_v62 = vld [vmem:[%s6120_s11 + $0x134] ss:$76 sps:$4 sm:$0xff]  }
 0x13c   :  { %v4543_v63 = vld [vmem:[%s6120_s11 + $0x130] ss:$76 sps:$4 sm:$0xff]   ;;  %v4551_v0 = vld [vmem:[%s6120_s11 + $0x1cc] ss:$76 sps:$4 sm:$0xff]   ;;  %v4549_v1 = vld [vmem:[%s6120_s11 + $0x1c8] ss:$76 sps:$4 sm:$0xff]  }
 0x13d   :  { %v1536_v6 = vadd.f32 %v4192_v5, %v1495_v2  ;;  %v4557_v2 = vld [vmem:[%s6120_s11 + $0x264] ss:$76 sps:$4 sm:$0xff]   ;;  %v4555_v3 = vld [vmem:[%s6120_s11 + $0x260] ss:$76 sps:$4 sm:$0xff]  }
 0x13e   :  { %v4561_v5 = vld [vmem:[%s6120_s11 + $0x2f8] ss:$76 sps:$4 sm:$0xff]  }
 0x155   :  { %v4209_v7 = vpop.f32.mrb[12].mxu0 }
 0x156   :  { %v4210_v8 = vpop.f32.mrb[13].mxu0 }
 0x157   :  { %v4211_v9 = vadd.f32 %v4210_v8, %v4209_v7  ;;  %v4212_v10 = vpop.f32.mrb[14].mxu0  ;;  %v4231_v11 = vpop.f32.mrb[12].mxu1 }
 0x158   :  { %v4213_v12 = vpop.f32.mrb[15].mxu0  ;;  %v4232_v15 = vpop.f32.mrb[13].mxu1 }
 0x159   :  { %v1574_v13 = vadd.f32 %v4211_v9, %v1533_v4  ;;  %v4214_v14 = vadd.f32 %v4213_v12, %v4212_v10  ;;  %v4233_v16 = vadd.f32 %v4232_v15, %v4231_v11  ;;  %v4234_v17 = vpop.f32.mrb[14].mxu1  ;;  %v4563_v4 = vld [vmem:[%s6120_s11 + $0x2fc] ss:$76 sps:$4 sm:$0xff]  }
 0x15a   :  { %v4235_v19 = vpop.f32.mrb[15].mxu1 }
 0x15b   :  { %v1577_v18 = vadd.f32 %v4214_v14, %v1536_v6  ;;  %v1615_v20 = vadd.f32 %v4233_v16, %v1574_v13  ;;  %v4236_v21 = vadd.f32 %v4235_v19, %v4234_v17  ;;  %v3877_v6 = vld [vmem:[%s6115_s6] ss:$0 sm:$0xff] }
 0x15c   :  { %v3881_v13 = vld [vmem:[%s6117_s8] ss:$0 sm:$0xff] }
 0x15d   :  { %v1618_v22 = vadd.f32 %v4236_v21, %v1577_v18 }
 0x163   :  { %v1696_v23 = vpop.f32.mrb[16].mxu1 }
 0x164   :  { %v4298_v24 = vpop.f32.mrb[17].mxu1 }
 0x165   :  { %v1699_v25 = vpop.f32.mrb[18].mxu1  ;;  %v4542_v24 = vld [vmem:[%s6120_s11 + $0xa4] ss:$76 sps:$4 sm:$0xff]  }
 0x166   :  { %v4299_v26 = vpop.f32.mrb[19].mxu1 }
 0x167   :  { %v4548_v26 = vld [vmem:[%s6120_s11 + $0x13c] ss:$76 sps:$4 sm:$0xff]  }
 0x175   :  { %v4253_v27 = vpop.f32.mrb[16].mxu0 }
 0x176   :  { %v4254_v28 = vpop.f32.mrb[17].mxu0 }
 0x177   :  { %v4255_v29 = vadd.f32 %v4254_v28, %v4253_v27  ;;  %v4256_v30 = vpop.f32.mrb[18].mxu0  ;;  %v4546_v27 = vld [vmem:[%s6120_s11 + $0x138] ss:$76 sps:$4 sm:$0xff]   ;;  %v4554_v28 = vld [vmem:[%s6120_s11 + $0x1d4] ss:$76 sps:$4 sm:$0xff]  }
 0x178   :  { %v4257_v31 = vpop.f32.mrb[19].mxu0 }
 0x179   :  { %v1656_v32 = vadd.f32 %v4255_v29, %v1615_v20  ;;  %v4258_v33 = vadd.f32 %v4257_v31, %v4256_v30  ;;  %v4552_v29 = vld [vmem:[%s6120_s11 + $0x1d0] ss:$76 sps:$4 sm:$0xff]   ;;  %v4560_v30 = vld [vmem:[%s6120_s11 + $0x26c] ss:$76 sps:$4 sm:$0xff]   ;;  %v4558_v31 = vld [vmem:[%s6120_s11 + $0x268] ss:$76 sps:$4 sm:$0xff]  }
 0x17b   :  { %v1697_v34 = vadd.f32 %v1696_v23, %v1656_v32  ;;  %v1659_v35 = vadd.f32 %v4258_v33, %v1618_v22  ;;  %v4534_v22 = vld [vmem:[%s6120_s11 + $0x8] ss:$76 sps:$4 sm:$0xff]   ;;  %v4566_v32 = vld [vmem:[%s6120_s11 + $0x304] ss:$76 sps:$4 sm:$0xff]   ;;  %v4564_v33 = vld [vmem:[%s6120_s11 + $0x300] ss:$76 sps:$4 sm:$0xff]  }
 0x17d   :  { %v1700_v36 = vadd.f32 %v1699_v25, %v1659_v35  ;;  %v1703_v37 = vmax.f32 %v1697_v34, 0.0  ;;  %v4540_v25 = vld [vmem:[%s6120_s11 + $0xa0] ss:$76 sps:$4 sm:$0xff]   ;;  %v4572_v35 = vld [vmem:[%s6120_s11 + $0x39c] ss:$76 sps:$4 sm:$0xff]  }
 0x17e   :  { %v4569_v34 = vld [vmem:[%s6120_s11 + $0x394] ss:$76 sps:$4 sm:$0xff]  }
 0x17f   :  { %v1704_v38 = vmax.f32 %v1700_v36, 0.0  ;;  %v4567_v36 = vld [vmem:[%s6120_s11 + $0x390] ss:$76 sps:$4 sm:$0xff]  }
 0x181   :  { %v1705_v39 = vpack.c.bf16 %v1704_v38, %v1703_v37  ;;  %v4570_v37 = vld [vmem:[%s6120_s11 + $0x398] ss:$76 sps:$4 sm:$0xff]  }
 0x182   :  { %v4575_v38 = vld [vmem:[%s6120_s11 + $0x42c] ss:$76 sps:$4 sm:$0xff]  }
 0x183   :  { %4317 = vmatmul.mubr.bf16.vlgmr.msra.gmra.mrb[20].mxu1 %v1705_v39  ;;  %v4578_v39 = vld [vmem:[%s6120_s11 + $0x434] ss:$76 sps:$4 sm:$0xff]  }
 0x184   :  { %4340 = vmatprep.mubr.msk.bf16.mxu1 %vm4818_vm0, %v4817_v47  ;;  %4337 = vmatpush3.bf16.msra.mxu1 %v4529_v55  ;;  %v4579_v55 = vld [vmem:[%s6120_s11 + $0x10] ss:$76 sps:$4 sm:$0xff]  }
 0x185   :  { %4338 = vmatprep.subr.bf16.mxu1 %v4817_v47 }
 0x188   :  { %4339 = vmatpush3.bf16.msra.mxu1 %v4530_v56  ;;  %v4582_v56 = vld [vmem:[%s6120_s11 + $0x18] ss:$76 sps:$4 sm:$0xff]  }
 0x189   :  { %3101 = vmatprep.subr.bf16.mxu1 %v4536_v59  ;;  %v4590_v59 = vld [vmem:[%s6120_s11 + $0xb4] ss:$76 sps:$4 sm:$0xff]  }
 0x256   :  { %v1811_v43 = vpop.f32.mrb[20].mxu1 }
 0x257   :  { %v1812_v44 = vadd.f32 %v3868_v42, %v1811_v43  ;;  %v4318_v45 = vpop.f32.mrb[21].mxu1  ;;  %v4819_v43 = vmov 0  }
 0x258   :  { %v1814_v46 = vpop.f32.mrb[22].mxu1  ;;  %v3885_v45 = vld [vmem:[%s6119_s10] ss:$0 sm:$0xff] }
 0x259   :  { %v1815_v48 = vadd.f32 %v3868_v42, %v1814_v46  ;;  %v4319_v49 = vpop.f32.mrb[23].mxu1  ;;  %v1818_v50 = vmax.f32 %v1812_v44, 0.0  ;;  %v4581_v42 = vld [vmem:[%s6120_s11 + $0x14] ss:$76 sps:$4 sm:$0xff]   ;;  %v4584_v44 = vld [vmem:[%s6120_s11 + $0x1c] ss:$76 sps:$4 sm:$0xff]  }
 0x25b   :  { %v1819_v51 = vmax.f32 %v1815_v48, 0.0 }
 0x25d   :  { %v1820_v53 = vpack.c.bf16 %v1819_v51, %v1818_v50 }
 0x25f   :  { %4325 = vmatmul.mubr.msk.bf16.vlgmr.msra.gmra.mrb[20].mxu0 %vm1844_vm2, %v1820_v53 }
 0x260   :  { %4329 = vmatpush3.bf16.msra.mxu0 %v4527_v52  ;;  %4332 = vmatprep.mubr.msk.bf16.mxu0 %vm4818_vm0, %v4817_v47 }
 0x261   :  { %4330 = vmatprep.subr.bf16.mxu0 %v4817_v47 }
 0x264   :  { %4331 = vmatpush3.bf16.msra.mxu0 %v4528_v54 }
 0x265   :  { %3058 = vmatprep.subr.bf16.mxu0 %v4533_v58  ;;  %v4587_v58 = vld [vmem:[%s6120_s11 + $0xac] ss:$76 sps:$4 sm:$0xff]  }
 0x267   :  { %4333 = vmatmul.mubr.msk.bf16.vlgmr.msra.gmra.mrb[24].mxu0 %vm1844_vm2, %v1820_v53 }
 0x268   :  { %3059 = vmatpush1.bf16.msra.mxu0 %v4531_v57  ;;  %3090 = vmatprep.mubr.bf16.mxu0 %v4819_v43 }
 0x269   :  { %3060 = vmatprep.subr.bf16.mxu0 %v4539_v60  ;;  %v4585_v60 = vld [vmem:[%s6120_s11 + $0xa8] ss:$76 sps:$4 sm:$0xff]  }
 0x26c   :  { %3061 = vmatpush1.bf16.msra.mxu0 %v4537_v61  ;;  %v4588_v61 = vld [vmem:[%s6120_s11 + $0xb0] ss:$76 sps:$4 sm:$0xff]  }
 0x26d   :  { %3062 = vmatprep.subr.bf16.mxu0 %v4545_v62  ;;  %v4593_v62 = vld [vmem:[%s6120_s11 + $0x144] ss:$76 sps:$4 sm:$0xff]  }
 0x270   :  { %3063 = vmatpush1.bf16.msra.mxu0 %v4543_v63  ;;  %v4596_v63 = vld [vmem:[%s6120_s11 + $0x14c] ss:$76 sps:$4 sm:$0xff]  }
 0x271   :  { %3064 = vmatprep.subr.bf16.mxu0 %v4551_v0  ;;  %v4591_v0 = vld [vmem:[%s6120_s11 + $0x140] ss:$76 sps:$4 sm:$0xff]  }
 0x274   :  { %3065 = vmatpush1.bf16.msra.mxu0 %v4549_v1  ;;  %v4594_v1 = vld [vmem:[%s6120_s11 + $0x148] ss:$76 sps:$4 sm:$0xff]  }
 0x275   :  { %3066 = vmatprep.subr.bf16.mxu0 %v4557_v2  ;;  %v4599_v2 = vld [vmem:[%s6120_s11 + $0x1dc] ss:$76 sps:$4 sm:$0xff]  }
 0x278   :  { %3067 = vmatpush1.bf16.msra.mxu0 %v4555_v3  ;;  %v4602_v3 = vld [vmem:[%s6120_s11 + $0x1e4] ss:$76 sps:$4 sm:$0xff]  }
 0x279   :  { %3068 = vmatprep.subr.bf16.mxu0 %v4563_v4  ;;  %v4597_v4 = vld [vmem:[%s6120_s11 + $0x1d8] ss:$76 sps:$4 sm:$0xff]  }
 0x27c   :  { %3069 = vmatpush1.bf16.msra.mxu0 %v4561_v5  ;;  %v4600_v5 = vld [vmem:[%s6120_s11 + $0x1e0] ss:$76 sps:$4 sm:$0xff]  }
 0x27d   :  { %3070 = vmatprep.subr.bf16.mxu0 %v4569_v34  ;;  %v4647_v34 = vld [vmem:[%s6120_s11 + $0x1ec] ss:$76 sps:$4 sm:$0xff]  }
 0x280   :  { %3071 = vmatpush1.bf16.msra.mxu0 %v4567_v36  ;;  %v4645_v36 = vld [vmem:[%s6120_s11 + $0x1e8] ss:$76 sps:$4 sm:$0xff]  }
 0x281   :  { %3072 = vmatprep.subr.bf16.mxu0 %v4575_v38  ;;  %v4653_v38 = vld [vmem:[%s6120_s11 + $0x284] ss:$76 sps:$4 sm:$0xff]  }
 0x284   :  { %3073 = vmatpush1.bf16.msra.mxu0 %v4573_v40  ;;  %v4651_v40 = vld [vmem:[%s6120_s11 + $0x280] ss:$76 sps:$4 sm:$0xff]  }
 0x285   :  { %3144 = vmatprep.subr.bf16.mxu0 %v4581_v42  ;;  %v4659_v42 = vld [vmem:[%s6120_s11 + $0x31c] ss:$76 sps:$4 sm:$0xff]  }
 0x332   :  { %v1882_v7 = vpop.f32.mrb[20].mxu0 }
 0x333   :  { %v1883_v8 = vadd.f32 %v3877_v6, %v1882_v7  ;;  %v4326_v9 = vpop.f32.mrb[21].mxu0  ;;  %v4608_v7 = vld [vmem:[%s6120_s11 + $0x27c] ss:$76 sps:$4 sm:$0xff]  }
 0x334   :  { %v1885_v10 = vpop.f32.mrb[22].mxu0  ;;  %v4606_v9 = vld [vmem:[%s6120_s11 + $0x278] ss:$76 sps:$4 sm:$0xff]  }
 0x335   :  { %1890 = vst.msk [vmem:[%s6122_s13] sm:$0xff] %vm1889_vm3, %v1883_v8  ;;  %v1886_v11 = vadd.f32 %v3877_v6, %v1885_v10  ;;  %v4327_v12 = vpop.f32.mrb[23].mxu0  ;;  %v4605_v6 = vld [vmem:[%s6120_s11 + $0x274] ss:$76 sps:$4 sm:$0xff]   ;;  %v4603_v8 = vld [vmem:[%s6120_s11 + $0x270] ss:$76 sps:$4 sm:$0xff]  }
 0x336   :  { %v4611_v10 = vld [vmem:[%s6120_s11 + $0x30c] ss:$76 sps:$4 sm:$0xff]   ;;  %v4609_v12 = vld [vmem:[%s6120_s11 + $0x308] ss:$76 sps:$4 sm:$0xff]  }
 0x337   :  { %1891 = vst.msk [vmem:[%s6122_s13 + $0x8] sm:$0xff] %vm1889_vm3, %v1886_v11  ;;  %v4614_v11 = vld [vmem:[%s6120_s11 + $0x314] ss:$76 sps:$4 sm:$0xff]  }
 0x33a   :  { %v1949_v14 = vpop.f32.mrb[24].mxu0 }
 0x33b   :  { %v1950_v15 = vadd.f32 %v3881_v13, %v1949_v14  ;;  %v4334_v16 = vpop.f32.mrb[25].mxu0  ;;  %v4617_v14 = vld [vmem:[%s6120_s11 + $0x3a4] ss:$76 sps:$4 sm:$0xff]  }
 0x33c   :  { %v1952_v17 = vpop.f32.mrb[26].mxu0  ;;  %v4615_v16 = vld [vmem:[%s6120_s11 + $0x3a0] ss:$76 sps:$4 sm:$0xff]  }
 0x33d   :  { %v1953_v18 = vadd.f32 %v3881_v13, %v1952_v17  ;;  %v4335_v19 = vpop.f32.mrb[27].mxu0  ;;  %v1956_v20 = vmax.f32 %v1950_v15, 0.0  ;;  %v4612_v13 = vld [vmem:[%s6120_s11 + $0x310] ss:$76 sps:$4 sm:$0xff]   ;;  %v4620_v15 = vld [vmem:[%s6120_s11 + $0x3ac] ss:$76 sps:$4 sm:$0xff]  }
 0x33e   :  { %v4618_v17 = vld [vmem:[%s6120_s11 + $0x3a8] ss:$76 sps:$4 sm:$0xff]   ;;  %v4626_v19 = vld [vmem:[%s6120_s11 + $0x444] ss:$76 sps:$4 sm:$0xff]  }
 0x33f   :  { %v1957_v21 = vmax.f32 %v1953_v18, 0.0  ;;  %v4623_v18 = vld [vmem:[%s6120_s11 + $0x43c] ss:$76 sps:$4 sm:$0xff]  }
 0x341   :  { %v1958_v23 = vpack.c.bf16 %v1957_v21, %v1956_v20  ;;  %v4621_v20 = vld [vmem:[%s6120_s11 + $0x438] ss:$76 sps:$4 sm:$0xff]   ;;  %v4624_v21 = vld [vmem:[%s6120_s11 + $0x440] ss:$76 sps:$4 sm:$0xff]  }
 0x343   :  { %4341 = vmatmul.mubr.msk.bf16.vlgmr.msra.gmra.mrb[24].mxu1 %vm1844_vm2, %v1958_v23  ;;  %v4632_v23 = vld [vmem:[%s6120_s11 + $0x2c] ss:$76 sps:$4 sm:$0xff]  }
 0x344   :  { %3102 = vmatpush1.bf16.msra.mxu1 %v4534_v22  ;;  %3133 = vmatprep.mubr.bf16.mxu1 %v4819_v43  ;;  %v4629_v22 = vld [vmem:[%s6120_s11 + $0x24] ss:$76 sps:$4 sm:$0xff]  }
 0x345   :  { %3103 = vmatprep.subr.bf16.mxu1 %v4542_v24  ;;  %v4627_v24 = vld [vmem:[%s6120_s11 + $0x20] ss:$76 sps:$4 sm:$0xff]  }
 0x348   :  { %3104 = vmatpush1.bf16.msra.mxu1 %v4540_v25  ;;  %v4630_v25 = vld [vmem:[%s6120_s11 + $0x28] ss:$76 sps:$4 sm:$0xff]  }
 0x349   :  { %3105 = vmatprep.subr.bf16.mxu1 %v4548_v26  ;;  %v4635_v26 = vld [vmem:[%s6120_s11 + $0xbc] ss:$76 sps:$4 sm:$0xff]  }
 0x34c   :  { %3106 = vmatpush1.bf16.msra.mxu1 %v4546_v27  ;;  %v4638_v27 = vld [vmem:[%s6120_s11 + $0xc4] ss:$76 sps:$4 sm:$0xff]  }
 0x34d   :  { %3107 = vmatprep.subr.bf16.mxu1 %v4554_v28  ;;  %v4633_v28 = vld [vmem:[%s6120_s11 + $0xb8] ss:$76 sps:$4 sm:$0xff]  }
 0x350   :  { %3108 = vmatpush1.bf16.msra.mxu1 %v4552_v29  ;;  %v4636_v29 = vld [vmem:[%s6120_s11 + $0xc0] ss:$76 sps:$4 sm:$0xff]  }
 0x351   :  { %3109 = vmatprep.subr.bf16.mxu1 %v4560_v30  ;;  %v4641_v30 = vld [vmem:[%s6120_s11 + $0x154] ss:$76 sps:$4 sm:$0xff]  }
 0x354   :  { %3110 = vmatpush1.bf16.msra.mxu1 %v4558_v31  ;;  %v4644_v31 = vld [vmem:[%s6120_s11 + $0x15c] ss:$76 sps:$4 sm:$0xff]  }
 0x355   :  { %3111 = vmatprep.subr.bf16.mxu1 %v4566_v32  ;;  %v4639_v32 = vld [vmem:[%s6120_s11 + $0x150] ss:$76 sps:$4 sm:$0xff]  }
 0x358   :  { %3112 = vmatpush1.bf16.msra.mxu1 %v4564_v33  ;;  %v4642_v33 = vld [vmem:[%s6120_s11 + $0x158] ss:$76 sps:$4 sm:$0xff]  }
 0x359   :  { %3113 = vmatprep.subr.bf16.mxu1 %v4572_v35  ;;  %v4650_v35 = vld [vmem:[%s6120_s11 + $0x1f4] ss:$76 sps:$4 sm:$0xff]  }
 0x35c   :  { %3114 = vmatpush1.bf16.msra.mxu1 %v4570_v37  ;;  %v4648_v37 = vld [vmem:[%s6120_s11 + $0x1f0] ss:$76 sps:$4 sm:$0xff]  }
 0x35d   :  { %3115 = vmatprep.subr.bf16.mxu1 %v4578_v39  ;;  %v4656_v39 = vld [vmem:[%s6120_s11 + $0x28c] ss:$76 sps:$4 sm:$0xff]  }
 0x360   :  { %3116 = vmatpush1.bf16.msra.mxu1 %v4576_v41  ;;  %v4654_v41 = vld [vmem:[%s6120_s11 + $0x288] ss:$76 sps:$4 sm:$0xff]  }
 0x361   :  { %3187 = vmatprep.subr.bf16.mxu1 %v4584_v44  ;;  %v4662_v44 = vld [vmem:[%s6120_s11 + $0x324] ss:$76 sps:$4 sm:$0xff]  }
 0x416   :  { %v2019_v46 = vpop.f32.mrb[24].mxu1 }
 0x417   :  { %v2020_v48 = vadd.f32 %v3885_v45, %v2019_v46  ;;  %v4342_v49 = vpop.f32.mrb[25].mxu1  ;;  %v4660_v46 = vld [vmem:[%s6120_s11 + $0x320] ss:$76 sps:$4 sm:$0xff]  }
 0x418   :  { %v2022_v50 = vpop.f32.mrb[26].mxu1  ;;  %v4668_v49 = vld [vmem:[%s6120_s11 + $0x3bc] ss:$76 sps:$4 sm:$0xff]  }
 0x419   :  { %v2023_v51 = vadd.f32 %v3885_v45, %v2022_v50  ;;  %v4343_v52 = vpop.f32.mrb[27].mxu1  ;;  %v2026_v53 = vmax.f32 %v2020_v48, 0.0  ;;  %v4657_v45 = vld [vmem:[%s6120_s11 + $0x318] ss:$76 sps:$4 sm:$0xff]   ;;  %v4665_v48 = vld [vmem:[%s6120_s11 + $0x3b4] ss:$76 sps:$4 sm:$0xff]  }
 0x41a   :  { %v4663_v50 = vld [vmem:[%s6120_s11 + $0x3b0] ss:$76 sps:$4 sm:$0xff]   ;;  %v4671_v52 = vld [vmem:[%s6120_s11 + $0x44c] ss:$76 sps:$4 sm:$0xff]  }
 0x41b   :  { %v2027_v54 = vmax.f32 %v2023_v51, 0.0  ;;  %v4666_v51 = vld [vmem:[%s6120_s11 + $0x3b8] ss:$76 sps:$4 sm:$0xff]  }
 0x41d   :  { %v5656_v57 = vpack.c.bf16 %v2027_v54, %v2026_v53  ;;  %v4674_v53 = vld [vmem:[%s6120_s11 + $0x454] ss:$76 sps:$4 sm:$0xff]  }
 0x41e   :  { %v4669_v54 = vld [vmem:[%s6120_s11 + $0x448] ss:$76 sps:$4 sm:$0xff]  }
 0x41f   :  { %3091 = vmatmul.mubr.bf16.vlgmr.msra.gmra.mrb[28].mxu0 %v5656_v57  ;;  %3134 = vmatmul.mubr.bf16.vlgmr.msra.gmra.mrb[28].mxu1 %v5656_v57 }
 0x420   :  { %3145 = vmatpush1.bf16.msra.mxu0 %v4579_v55  ;;  %3188 = vmatpush1.bf16.msra.mxu1 %v4582_v56  ;;  %v4672_v55 = vld [vmem:[%s6120_s11 + $0x450] ss:$76 sps:$4 sm:$0xff]   ;;  %v4677_v56 = vld [vmem:[%s6120_s11 + $0x34] ss:$76 sps:$4 sm:$0xff]  }
 0x421   :  { %3146 = vmatprep.subr.bf16.mxu0 %v4587_v58  ;;  %3189 = vmatprep.subr.bf16.mxu1 %v4590_v59  ;;  %v4680_v58 = vld [vmem:[%s6120_s11 + $0x3c] ss:$76 sps:$4 sm:$0xff]  }
 0x422   :  { %3176 = vmatprep.mubr.bf16.mxu0 %v4819_v43  ;;  %3219 = vmatprep.mubr.bf16.mxu1 %v4819_v43  ;;  %v4675_v59 = vld [vmem:[%s6120_s11 + $0x30] ss:$76 sps:$4 sm:$0xff]  }
 0x424   :  { %3147 = vmatpush1.bf16.msra.mxu0 %v4585_v60  ;;  %3190 = vmatpush1.bf16.msra.mxu1 %v4588_v61  ;;  %v4678_v60 = vld [vmem:[%s6120_s11 + $0x38] ss:$76 sps:$4 sm:$0xff]  }
 0x425   :  { %3148 = vmatprep.subr.bf16.mxu0 %v4593_v62  ;;  %3191 = vmatprep.subr.bf16.mxu1 %v4596_v63  ;;  %v4683_v61 = vld [vmem:[%s6120_s11 + $0xcc] ss:$76 sps:$4 sm:$0xff]   ;;  %v4686_v62 = vld [vmem:[%s6120_s11 + $0xd4] ss:$76 sps:$4 sm:$0xff]  }
 0x426   :  { %v4681_v63 = vld [vmem:[%s6120_s11 + $0xc8] ss:$76 sps:$4 sm:$0xff]  }
 0x428   :  { %3149 = vmatpush1.bf16.msra.mxu0 %v4591_v0  ;;  %3192 = vmatpush1.bf16.msra.mxu1 %v4594_v1  ;;  %v4684_v0 = vld [vmem:[%s6120_s11 + $0xd0] ss:$76 sps:$4 sm:$0xff]  }
 0x429   :  { %3150 = vmatprep.subr.bf16.mxu0 %v4599_v2  ;;  %3193 = vmatprep.subr.bf16.mxu1 %v4602_v3  ;;  %v4689_v1 = vld [vmem:[%s6120_s11 + $0x164] ss:$76 sps:$4 sm:$0xff]   ;;  %v4692_v2 = vld [vmem:[%s6120_s11 + $0x16c] ss:$76 sps:$4 sm:$0xff]  }
 0x42a   :  { %v4687_v3 = vld [vmem:[%s6120_s11 + $0x160] ss:$76 sps:$4 sm:$0xff]  }
 0x42c   :  { %3151 = vmatpush1.bf16.msra.mxu0 %v4597_v4  ;;  %3194 = vmatpush1.bf16.msra.mxu1 %v4600_v5  ;;  %v4690_v4 = vld [vmem:[%s6120_s11 + $0x168] ss:$76 sps:$4 sm:$0xff]  }
 0x42d   :  { %3152 = vmatprep.subr.bf16.mxu0 %v4605_v6  ;;  %3195 = vmatprep.subr.bf16.mxu1 %v4608_v7  ;;  %v4695_v5 = vld [vmem:[%s6120_s11 + $0x1fc] ss:$76 sps:$4 sm:$0xff]   ;;  %v4698_v6 = vld [vmem:[%s6120_s11 + $0x204] ss:$76 sps:$4 sm:$0xff]  }
 0x42e   :  { %v4693_v7 = vld [vmem:[%s6120_s11 + $0x1f8] ss:$76 sps:$4 sm:$0xff]  }
 0x430   :  { %3153 = vmatpush1.bf16.msra.mxu0 %v4603_v8  ;;  %3196 = vmatpush1.bf16.msra.mxu1 %v4606_v9  ;;  %v4696_v8 = vld [vmem:[%s6120_s11 + $0x200] ss:$76 sps:$4 sm:$0xff]  }
 0x431   :  { %3154 = vmatprep.subr.bf16.mxu0 %v4611_v10  ;;  %3197 = vmatprep.subr.bf16.mxu1 %v4614_v11  ;;  %v4701_v9 = vld [vmem:[%s6120_s11 + $0x294] ss:$76 sps:$4 sm:$0xff]   ;;  %v4704_v10 = vld [vmem:[%s6120_s11 + $0x29c] ss:$76 sps:$4 sm:$0xff]  }
 0x432   :  { %v4699_v11 = vld [vmem:[%s6120_s11 + $0x290] ss:$76 sps:$4 sm:$0xff]  }
 0x434   :  { %3155 = vmatpush1.bf16.msra.mxu0 %v4609_v12  ;;  %3198 = vmatpush1.bf16.msra.mxu1 %v4612_v13  ;;  %v4702_v12 = vld [vmem:[%s6120_s11 + $0x298] ss:$76 sps:$4 sm:$0xff]  }
 0x435   :  { %3156 = vmatprep.subr.bf16.mxu0 %v4617_v14  ;;  %3199 = vmatprep.subr.bf16.mxu1 %v4620_v15  ;;  %v4707_v13 = vld [vmem:[%s6120_s11 + $0x32c] ss:$76 sps:$4 sm:$0xff]   ;;  %v4710_v14 = vld [vmem:[%s6120_s11 + $0x334] ss:$76 sps:$4 sm:$0xff]  }
 0x436   :  { %v4705_v15 = vld [vmem:[%s6120_s11 + $0x328] ss:$76 sps:$4 sm:$0xff]  }
 0x438   :  { %3157 = vmatpush1.bf16.msra.mxu0 %v4615_v16  ;;  %3200 = vmatpush1.bf16.msra.mxu1 %v4618_v17  ;;  %v4708_v16 = vld [vmem:[%s6120_s11 + $0x330] ss:$76 sps:$4 sm:$0xff]  }
 0x439   :  { %3158 = vmatprep.subr.bf16.mxu0 %v4623_v18  ;;  %3201 = vmatprep.subr.bf16.mxu1 %v4626_v19  ;;  %v4713_v17 = vld [vmem:[%s6120_s11 + $0x3c4] ss:$76 sps:$4 sm:$0xff]   ;;  %v4716_v18 = vld [vmem:[%s6120_s11 + $0x3cc] ss:$76 sps:$4 sm:$0xff]  }
 0x43a   :  { %v4711_v19 = vld [vmem:[%s6120_s11 + $0x3c0] ss:$76 sps:$4 sm:$0xff]  }
 0x43c   :  { %3159 = vmatpush1.bf16.msra.mxu0 %v4621_v20  ;;  %3202 = vmatpush1.bf16.msra.mxu1 %v4624_v21  ;;  %v4714_v20 = vld [vmem:[%s6120_s11 + $0x3c8] ss:$76 sps:$4 sm:$0xff]  }
 0x43d   :  { %3230 = vmatprep.subr.bf16.mxu0 %v4629_v22  ;;  %3273 = vmatprep.subr.bf16.mxu1 %v4632_v23  ;;  %v4719_v21 = vld [vmem:[%s6120_s11 + $0x45c] ss:$76 sps:$4 sm:$0xff]   ;;  %v4722_v22 = vld [vmem:[%s6120_s11 + $0x464] ss:$76 sps:$4 sm:$0xff]  }
 0x43e   :  { %v4717_v23 = vld [vmem:[%s6120_s11 + $0x458] ss:$76 sps:$4 sm:$0xff]  }
 0x43f   :  { %3177 = vmatmul.mubr.bf16.vlgmr.msra.gmra.mrb[32].mxu0 %v5656_v57  ;;  %3220 = vmatmul.mubr.bf16.vlgmr.msra.gmra.mrb[32].mxu1 %v5656_v57 }
 0x440   :  { %3231 = vmatpush1.bf16.msra.mxu0 %v4627_v24  ;;  %3274 = vmatpush1.bf16.msra.mxu1 %v4630_v25  ;;  %v4720_v24 = vld [vmem:[%s6120_s11 + $0x460] ss:$76 sps:$4 sm:$0xff]   ;;  %v4725_v25 = vld [vmem:[%s6120_s11 + $0x44] ss:$76 sps:$4 sm:$0xff]  }
 0x441   :  { %3232 = vmatprep.subr.bf16.mxu0 %v4635_v26  ;;  %3275 = vmatprep.subr.bf16.mxu1 %v4638_v27  ;;  %v4723_v26 = vld [vmem:[%s6120_s11 + $0x40] ss:$76 sps:$4 sm:$0xff]   ;;  %v4726_v27 = vld [vmem:[%s6120_s11 + $0x48] ss:$76 sps:$4 sm:$0xff]  }
 0x442   :  { %3262 = vmatprep.mubr.bf16.mxu0 %v4819_v43  ;;  %3305 = vmatprep.mubr.bf16.mxu1 %v4819_v43 }
 0x444   :  { %3233 = vmatpush1.bf16.msra.mxu0 %v4633_v28  ;;  %3276 = vmatpush1.bf16.msra.mxu1 %v4636_v29  ;;  %v4729_v28 = vld [vmem:[%s6120_s11 + $0xdc] ss:$76 sps:$4 sm:$0xff]   ;;  %v4727_v29 = vld [vmem:[%s6120_s11 + $0xd8] ss:$76 sps:$4 sm:$0xff]  }
 0x445   :  { %3234 = vmatprep.subr.bf16.mxu0 %v4641_v30  ;;  %3277 = vmatprep.subr.bf16.mxu1 %v4644_v31  ;;  %v4730_v30 = vld [vmem:[%s6120_s11 + $0xe0] ss:$76 sps:$4 sm:$0xff]  }
 0x446   :  { %v4733_v31 = vld [vmem:[%s6120_s11 + $0x174] ss:$76 sps:$4 sm:$0xff]  }
 0x448   :  { %3235 = vmatpush1.bf16.msra.mxu0 %v4639_v32  ;;  %3278 = vmatpush1.bf16.msra.mxu1 %v4642_v33  ;;  %v4731_v32 = vld [vmem:[%s6120_s11 + $0x170] ss:$76 sps:$4 sm:$0xff]   ;;  %v4734_v33 = vld [vmem:[%s6120_s11 + $0x178] ss:$76 sps:$4 sm:$0xff]  }
 0x449   :  { %3236 = vmatprep.subr.bf16.mxu0 %v4647_v34  ;;  %3279 = vmatprep.subr.bf16.mxu1 %v4650_v35  ;;  %v4735_v34 = vld [vmem:[%s6120_s11 + $0x208] ss:$76 sps:$4 sm:$0xff]   ;;  %v4738_v35 = vld [vmem:[%s6120_s11 + $0x210] ss:$76 sps:$4 sm:$0xff]  }
 0x44c   :  { %3237 = vmatpush1.bf16.msra.mxu0 %v4645_v36  ;;  %3280 = vmatpush1.bf16.msra.mxu1 %v4648_v37  ;;  %v4741_v36 = vld [vmem:[%s6120_s11 + $0x2a4] ss:$76 sps:$4 sm:$0xff]   ;;  %v4739_v37 = vld [vmem:[%s6120_s11 + $0x2a0] ss:$76 sps:$4 sm:$0xff]  }
 0x44d   :  { %3238 = vmatprep.subr.bf16.mxu0 %v4653_v38  ;;  %3281 = vmatprep.subr.bf16.mxu1 %v4656_v39  ;;  %v4742_v38 = vld [vmem:[%s6120_s11 + $0x2a8] ss:$76 sps:$4 sm:$0xff]  }
 0x44e   :  { %v4745_v39 = vld [vmem:[%s6120_s11 + $0x33c] ss:$76 sps:$4 sm:$0xff]  }
 0x450   :  { %3239 = vmatpush1.bf16.msra.mxu0 %v4651_v40  ;;  %3282 = vmatpush1.bf16.msra.mxu1 %v4654_v41  ;;  %v4743_v40 = vld [vmem:[%s6120_s11 + $0x338] ss:$76 sps:$4 sm:$0xff]   ;;  %v4746_v41 = vld [vmem:[%s6120_s11 + $0x340] ss:$76 sps:$4 sm:$0xff]  }
 0x451   :  { %3240 = vmatprep.subr.bf16.mxu0 %v4659_v42  ;;  %3283 = vmatprep.subr.bf16.mxu1 %v4662_v44  ;;  %v4749_v42 = vld [vmem:[%s6120_s11 + $0x3d4] ss:$76 sps:$4 sm:$0xff]   ;;  %v4747_v44 = vld [vmem:[%s6120_s11 + $0x3d0] ss:$76 sps:$4 sm:$0xff]  }
 0x454   :  { %3241 = vmatpush1.bf16.msra.mxu0 %v4657_v45  ;;  %3284 = vmatpush1.bf16.msra.mxu1 %v4660_v46  ;;  %v4750_v45 = vld [vmem:[%s6120_s11 + $0x3d8] ss:$76 sps:$4 sm:$0xff]  }
 0x455   :  { %3242 = vmatprep.subr.bf16.mxu0 %v4665_v48  ;;  %3285 = vmatprep.subr.bf16.mxu1 %v4668_v49  ;;  %v4753_v46 = vld [vmem:[%s6120_s11 + $0x46c] ss:$76 sps:$4 sm:$0xff]   ;;  %v4751_v48 = vld [vmem:[%s6120_s11 + $0x468] ss:$76 sps:$4 sm:$0xff]   ;;  %v4754_v49 = vld [vmem:[%s6120_s11 + $0x470] ss:$76 sps:$4 sm:$0xff]  }
 0x458   :  { %3243 = vmatpush1.bf16.msra.mxu0 %v4663_v50  ;;  %3286 = vmatpush1.bf16.msra.mxu1 %v4666_v51  ;;  %v2195_v50 = vlaneseq }
 0x459   :  { %3244 = vmatprep.subr.bf16.mxu0 %v4671_v52  ;;  %3287 = vmatprep.subr.bf16.mxu1 %v4674_v53 }
 0x45a   :  { %v6033_v51 = vshrl.u32 %v2195_v50, 7 }
 0x45c   :  { %3245 = vmatpush1.bf16.msra.mxu0 %v4669_v54  ;;  %3288 = vmatpush1.bf16.msra.mxu1 %v4672_v55  ;;  %v6036_v52 = vsub.s32 0, %v6033_v51  ;;  %v6039_v53 = vsub.s32 2, %v6033_v51  ;;  %v6044_v54 = vld [vmem:[%s6121_s12] sm:$0xff]  ;;  %v2209_v55 = vsub.s32 3, %v6033_v51 }
 0x45d   :  { %3316 = vmatprep.subr.bf16.mxu0 %v4677_v56  ;;  %3359 = vmatprep.subr.bf16.mxu1 %v4680_v58 }
 0x45e   :  { %v2206_v56 = vrot.slane %v6044_v54, %v6039_v53 }
 0x45f   :  { %3263 = vmatmul.mubr.bf16.vlgmr.msra.gmra.mrb[36].mxu0 %v5656_v57  ;;  %3306 = vmatmul.mubr.bf16.vlgmr.msra.gmra.mrb[36].mxu1 %v5656_v57 }
 0x460   :  { %3317 = vmatpush1.bf16.msra.mxu0 %v4675_v59  ;;  %3360 = vmatpush1.bf16.msra.mxu1 %v4678_v60 }
 0x461   :  { %3318 = vmatprep.subr.bf16.mxu0 %v4683_v61  ;;  %3361 = vmatprep.subr.bf16.mxu1 %v4686_v62  ;;  %v2210_v61 = vrot.slane %v6044_v54, %v2209_v55 }
 0x462   :  { %3348 = vmatprep.mubr.bf16.mxu0 %v4819_v43  ;;  %3391 = vmatprep.mubr.bf16.mxu1 %v4819_v43 }
 0x464   :  { %3319 = vmatpush1.bf16.msra.mxu0 %v4681_v63  ;;  %3362 = vmatpush1.bf16.msra.mxu1 %v4684_v0 }
 0x465   :  { %3320 = vmatprep.subr.bf16.mxu0 %v4689_v1  ;;  %3363 = vmatprep.subr.bf16.mxu1 %v4692_v2 }
 0x468   :  { %3321 = vmatpush1.bf16.msra.mxu0 %v4687_v3  ;;  %3364 = vmatpush1.bf16.msra.mxu1 %v4690_v4 }
 0x469   :  { %3322 = vmatprep.subr.bf16.mxu0 %v4695_v5  ;;  %3365 = vmatprep.subr.bf16.mxu1 %v4698_v6 }
 0x46c   :  { %3323 = vmatpush1.bf16.msra.mxu0 %v4693_v7  ;;  %3366 = vmatpush1.bf16.msra.mxu1 %v4696_v8 }
 0x46d   :  { %3324 = vmatprep.subr.bf16.mxu0 %v4701_v9  ;;  %3367 = vmatprep.subr.bf16.mxu1 %v4704_v10 }
 0x470   :  { %3325 = vmatpush1.bf16.msra.mxu0 %v4699_v11  ;;  %3368 = vmatpush1.bf16.msra.mxu1 %v4702_v12 }
 0x471   :  { %3326 = vmatprep.subr.bf16.mxu0 %v4707_v13  ;;  %3369 = vmatprep.subr.bf16.mxu1 %v4710_v14 }
 0x474   :  { %3327 = vmatpush1.bf16.msra.mxu0 %v4705_v15  ;;  %3370 = vmatpush1.bf16.msra.mxu1 %v4708_v16 }
 0x475   :  { %3328 = vmatprep.subr.bf16.mxu0 %v4713_v17  ;;  %3371 = vmatprep.subr.bf16.mxu1 %v4716_v18 }
 0x478   :  { %3329 = vmatpush1.bf16.msra.mxu0 %v4711_v19  ;;  %3372 = vmatpush1.bf16.msra.mxu1 %v4714_v20 }
 0x479   :  { %3330 = vmatprep.subr.bf16.mxu0 %v4719_v21  ;;  %3373 = vmatprep.subr.bf16.mxu1 %v4722_v22 }
 0x47c   :  { %3331 = vmatpush1.bf16.msra.mxu0 %v4717_v23  ;;  %3374 = vmatpush1.bf16.msra.mxu1 %v4720_v24 }
 0x47d   :  { %3402 = vmatprep.subr.bf16.mxu0 %v4725_v25  ;;  %4344 = vmatprep.subr.bf16.mxu1 %v4817_v47 }
 0x47f   :  { %3349 = vmatmul.mubr.bf16.vlgmr.msra.gmra.mrb[40].mxu0 %v5656_v57  ;;  %3392 = vmatmul.mubr.bf16.vlgmr.msra.gmra.mrb[40].mxu1 %v5656_v57 }
 0x480   :  { %3403 = vmatpush1.bf16.msra.mxu0 %v4723_v26  ;;  %4345 = vmatpush3.bf16.msra.mxu1 %v4726_v27 }
 0x481   :  { %3404 = vmatprep.subr.bf16.mxu0 %v4729_v28  ;;  %4346 = vmatprep.subr.bf16.mxu1 %v4817_v47 }
 0x482   :  { %3434 = vmatprep.mubr.bf16.mxu0 %v4819_v43  ;;  %4360 = vmatprep.mubr.msk.bf16.mxu1 %vm4818_vm0, %v4817_v47  ;;  %v4737_v43 = vld [vmem:[%s6120_s11 + $0x20c] ss:$76 sps:$4 sm:$0xff]  }
 0x484   :  { %3405 = vmatpush1.bf16.msra.mxu0 %v4727_v29  ;;  %4347 = vmatpush3.bf16.msra.mxu1 %v4730_v30 }
 0x485   :  { %3406 = vmatprep.subr.bf16.mxu0 %v4733_v31  ;;  %4348 = vmatprep.subr.bf16.mxu1 %v4817_v47 }
 0x488   :  { %3407 = vmatpush1.bf16.msra.mxu0 %v4731_v32  ;;  %4349 = vmatpush3.bf16.msra.mxu1 %v4734_v33 }
 0x489   :  { %3408 = vmatprep.subr.bf16.mxu0 %v4737_v43  ;;  %4350 = vmatprep.subr.bf16.mxu1 %v4817_v47  ;;  %v2213_v43 = vsub.s32 4, %v6033_v51 }
 0x48c   :  { %3409 = vmatpush1.bf16.msra.mxu0 %v4735_v34  ;;  %4351 = vmatpush3.bf16.msra.mxu1 %v4738_v35  ;;  %v2221_v34 = vsub.s32 6, %v6033_v51 }
 0x48d   :  { %3410 = vmatprep.subr.bf16.mxu0 %v4741_v36  ;;  %4352 = vmatprep.subr.bf16.mxu1 %v4817_v47 }
 0x490   :  { %3411 = vmatpush1.bf16.msra.mxu0 %v4739_v37  ;;  %4353 = vmatpush3.bf16.msra.mxu1 %v4742_v38  ;;  %v2217_v37 = vsub.s32 5, %v6033_v51  ;;  %v2225_v38 = vsub.s32 7, %v6033_v51 }
 0x491   :  { %3412 = vmatprep.subr.bf16.mxu0 %v4745_v39  ;;  %4354 = vmatprep.subr.bf16.mxu1 %v4817_v47  ;;  %v2214_v39 = vrot.slane %v6044_v54, %v2213_v43 }
 0x494   :  { %3413 = vmatpush1.bf16.msra.mxu0 %v4743_v40  ;;  %4355 = vmatpush3.bf16.msra.mxu1 %v4746_v41  ;;  %v2222_v40 = vrot.slane %v6044_v54, %v2221_v34 }
 0x495   :  { %3414 = vmatprep.subr.bf16.mxu0 %v4749_v42  ;;  %4356 = vmatprep.subr.bf16.mxu1 %v4817_v47 }
 0x498   :  { %3415 = vmatpush1.bf16.msra.mxu0 %v4747_v44  ;;  %4357 = vmatpush3.bf16.msra.mxu1 %v4750_v45  ;;  %v2218_v44 = vrot.slane %v6044_v54, %v2217_v37  ;;  %v2226_v45 = vrot.slane %v6044_v54, %v2225_v38 }
 0x499   :  { %3416 = vmatprep.subr.bf16.mxu0 %v4753_v46  ;;  %4358 = vmatprep.subr.bf16.mxu1 %v4817_v47  ;;  %v6047_v47 = vsub.s32 1, %v6033_v51 }
 0x49b   :  { %v2202_v60 = vrot.slane %v6044_v54, %v6047_v47 }
 0x49c   :  { %3417 = vmatpush1.bf16.msra.mxu0 %v4751_v48  ;;  %4359 = vmatpush3.bf16.msra.mxu1 %v4754_v49 }
 0x49f   :  { %3435 = vmatmul.mubr.bf16.vlgmr.msra.gmra.mrb[44].mxu0 %v5656_v57  ;;  %4361 = vmatmul.mubr.bf16.vlgmr.msra.gmra.mrb[44].mxu1 %v5656_v57  ;;  %v2198_v57 = vrot.slane %v6044_v54, %v6036_v52 }
 0x4f2   :  { %v3092_v58 = vpop.f32.mrb[28].mxu0  ;;  %v3135_v59 = vpop.f32.mrb[28].mxu1 }
 0x4f3   :  { %v3094_v62 = vpop.f32.mrb[29].mxu0  ;;  %v3137_v63 = vpop.f32.mrb[29].mxu1  ;;  %v3093_v2 = vadd.f32 %v3092_v58, %v2198_v57  ;;  %v3136_v3 = vadd.f32 %v3135_v59, %v2206_v56 }
 0x4f4   :  { %v3096_v0 = vpop.f32.mrb[30].mxu0  ;;  %v3139_v1 = vpop.f32.mrb[30].mxu1  ;;  %v3095_v8 = vadd.f32 %v3094_v62, %v2202_v60  ;;  %v3138_v9 = vadd.f32 %v3137_v63, %v2210_v61 }
 0x4f5   :  { %v3097_v4 = vadd.f32 %v3096_v0, %v2198_v57  ;;  %v3140_v5 = vadd.f32 %v3139_v1, %v2206_v56  ;;  %v3098_v6 = vpop.f32.mrb[31].mxu0  ;;  %v3141_v7 = vpop.f32.mrb[31].mxu1 }
 0x4f6   :  { %v3099_v10 = vadd.f32 %v3098_v6, %v2202_v60  ;;  %v3142_v11 = vadd.f32 %v3141_v7, %v2210_v61 }
 0x4f7   :  { %v3486_v12 = vpack.c.bf16 %v3097_v4, %v3093_v2  ;;  %v3488_v13 = vpack.c.bf16 %v3140_v5, %v3136_v3 }
 0x4f8   :  { %v3487_v14 = vpack.c.bf16 %v3099_v10, %v3095_v8  ;;  %v3489_v15 = vpack.c.bf16 %v3142_v11, %v3138_v9 }
 0x4f9   :  { %v3505_v16 = vmul.bf16 1056980736, %v3486_v12  ;;  %v3507_v17 = vmul.bf16 1056980736, %v3488_v13 }
 0x4fa   :  { %v3506_v18 = vmul.bf16 1056980736, %v3487_v14  ;;  %v3508_v19 = vmul.bf16 1056980736, %v3489_v15 }
 0x4fb   :  { %4755 = vtanh.bf16 %v3505_v16 }
 0x4fc   :  { %4757 = vtanh.bf16 %v3507_v17 }
 0x4fd   :  { %4759 = vtanh.bf16 %v3506_v18 }
 0x4fe   :  { %4761 = vtanh.bf16 %v3508_v19 }
 0x506   :  { %v4756_v20 = vpop.eup %4755 }
 0x507   :  { %v4758_v21 = vpop.eup %4757  ;;  %v3543_v22 = vmul.bf16 1056980736, %v4756_v20 }
 0x508   :  { %v4760_v23 = vpop.eup %4759  ;;  %v3545_v24 = vmul.bf16 1056980736, %v4758_v21 }
 0x509   :  { %v4762_v25 = vpop.eup %4761  ;;  %v3562_v26 = vadd.bf16 1056980736, %v3543_v22  ;;  %v3544_v27 = vmul.bf16 1056980736, %v4760_v23  ;;  %v2190_v23 = vld [vmem:[%s6121_s12 + $0x8] sm:$0xff] }
 0x50a   :  { %v3564_v28 = vadd.bf16 1056980736, %v3545_v24  ;;  %v3546_v29 = vmul.bf16 1056980736, %v4762_v25 }
 0x50b   :  { %v3563_v30 = vadd.bf16 1056980736, %v3544_v27  ;;  %v2230_v27 = vrot.slane %v2190_v23, %v6036_v52 }
 0x50c   :  { %v3565_v31 = vadd.bf16 1056980736, %v3546_v29 }
 0x50d   :  { %v4041_v32 = vcombine.low %v3562_v26, %v3563_v30  ;;  %v4051_v33 = vcombine.high %v3562_v26, %v3563_v30  ;;  %v2242_v26 = vrot.slane %v2190_v23, %v2209_v55 }
 0x50e   :  { %v4042_v35 = vcombine.low %v3564_v28, %v3565_v31  ;;  %v4052_v36 = vcombine.high %v3564_v28, %v3565_v31  ;;  %v2238_v28 = vrot.slane %v2190_v23, %v6039_v53  ;;  %v2234_v31 = vrot.slane %v2190_v23, %v6047_v47 }
 0x50f   :  { %3678 = vst [vmem:[#allocation2] sm:$0xff] %v4041_v32  ;;  %3689 = vst [vmem:[#allocation2 + $0x4c] sm:$0xff] %v4051_v33 }
 0x510   :  { %3679 = vst [vmem:[#allocation2 + $0x8] sm:$0xff] %v4042_v35  ;;  %3690 = vst [vmem:[#allocation2 + $0x54] sm:$0xff] %v4052_v36 }
 0x512   :  { %v3178_v41 = vpop.f32.mrb[32].mxu0  ;;  %v3221_v42 = vpop.f32.mrb[32].mxu1 }
 0x513   :  { %v3180_v46 = vpop.f32.mrb[33].mxu0  ;;  %v3223_v48 = vpop.f32.mrb[33].mxu1  ;;  %v3179_v57 = vadd.f32 %v3178_v41, %v2214_v39  ;;  %v3222_v56 = vadd.f32 %v3221_v42, %v2222_v40 }
 0x514   :  { %v3182_v49 = vpop.f32.mrb[34].mxu0  ;;  %v3225_v50 = vpop.f32.mrb[34].mxu1  ;;  %v3181_v62 = vadd.f32 %v3180_v46, %v2218_v44  ;;  %v3224_v63 = vadd.f32 %v3223_v48, %v2226_v45 }
 0x515   :  { %v3183_v58 = vadd.f32 %v3182_v49, %v2214_v39  ;;  %v3226_v59 = vadd.f32 %v3225_v50, %v2222_v40  ;;  %v3184_v60 = vpop.f32.mrb[35].mxu0  ;;  %v3227_v61 = vpop.f32.mrb[35].mxu1 }
 0x516   :  { %v3185_v0 = vadd.f32 %v3184_v60, %v2218_v44  ;;  %v3228_v1 = vadd.f32 %v3227_v61, %v2226_v45 }
 0x517   :  { %v3490_v2 = vpack.c.bf16 %v3183_v58, %v3179_v57  ;;  %v3492_v3 = vpack.c.bf16 %v3226_v59, %v3222_v56 }
 0x518   :  { %v3491_v4 = vpack.c.bf16 %v3185_v0, %v3181_v62  ;;  %v3493_v5 = vpack.c.bf16 %v3228_v1, %v3224_v63 }
 0x519   :  { %v3509_v6 = vmul.bf16 1056980736, %v3490_v2  ;;  %v3511_v54 = vmul.bf16 1056980736, %v3492_v3 }
 0x51a   :  { %v3510_v7 = vmul.bf16 1056980736, %v3491_v4  ;;  %v3512_v8 = vmul.bf16 1056980736, %v3493_v5 }
 0x51b   :  { %4763 = vtanh.bf16 %v3509_v6 }
 0x51c   :  { %4765 = vtanh.bf16 %v3511_v54 }
 0x51d   :  { %4767 = vtanh.bf16 %v3510_v7 }
 0x51e   :  { %4769 = vtanh.bf16 %v3512_v8 }
 0x526   :  { %v4764_v9 = vpop.eup %4763 }
 0x527   :  { %v4766_v10 = vpop.eup %4765  ;;  %v3547_v11 = vmul.bf16 1056980736, %v4764_v9 }
 0x528   :  { %v4768_v12 = vpop.eup %4767  ;;  %v3549_v13 = vmul.bf16 1056980736, %v4766_v10 }
 0x529   :  { %v4770_v14 = vpop.eup %4769  ;;  %v3566_v15 = vadd.bf16 1056980736, %v3547_v11  ;;  %v3548_v16 = vmul.bf16 1056980736, %v4768_v12 }
 0x52a   :  { %v3568_v17 = vadd.bf16 1056980736, %v3549_v13  ;;  %v3550_v18 = vmul.bf16 1056980736, %v4770_v14  ;;  %v2246_v14 = vrot.slane %v2190_v23, %v2213_v43 }
 0x52b   :  { %v3567_v19 = vadd.bf16 1056980736, %v3548_v16  ;;  %v2250_v16 = vrot.slane %v2190_v23, %v2217_v37 }
 0x52c   :  { %v3569_v20 = vadd.bf16 1056980736, %v3550_v18 }
 0x52d   :  { %v4043_v21 = vcombine.low %v3566_v15, %v3567_v19  ;;  %v4053_v22 = vcombine.high %v3566_v15, %v3567_v19  ;;  %v2254_v15 = vrot.slane %v2190_v23, %v2221_v34 }
 0x52e   :  { %v4044_v24 = vcombine.low %v3568_v17, %v3569_v20  ;;  %v4054_v25 = vcombine.high %v3568_v17, %v3569_v20  ;;  %v2258_v17 = vrot.slane %v2190_v23, %v2225_v38 }
 0x52f   :  { %3680 = vst [vmem:[#allocation2 + $0x10] sm:$0xff] %v4043_v21  ;;  %3691 = vst [vmem:[#allocation2 + $0x5c] sm:$0xff] %v4053_v22 }
 0x530   :  { %3681 = vst [vmem:[#allocation2 + $0x18] sm:$0xff] %v4044_v24  ;;  %3692 = vst [vmem:[#allocation2 + $0x64] sm:$0xff] %v4054_v25 }
 0x532   :  { %v3264_v29 = vpop.f32.mrb[36].mxu0  ;;  %v3307_v30 = vpop.f32.mrb[36].mxu1 }
 0x533   :  { %v3266_v32 = vpop.f32.mrb[37].mxu0  ;;  %v3309_v33 = vpop.f32.mrb[37].mxu1  ;;  %v3265_v40 = vadd.f32 %v3264_v29, %v2230_v27  ;;  %v3308_v41 = vadd.f32 %v3307_v30, %v2238_v28 }
 0x534   :  { %v3310_v35 = vadd.f32 %v3309_v33, %v2242_v26  ;;  %v3268_v36 = vpop.f32.mrb[38].mxu0  ;;  %v3311_v39 = vpop.f32.mrb[38].mxu1  ;;  %v3267_v55 = vadd.f32 %v3266_v32, %v2234_v31 }
 0x535   :  { %v3269_v42 = vadd.f32 %v3268_v36, %v2230_v27  ;;  %v3312_v44 = vadd.f32 %v3311_v39, %v2238_v28  ;;  %v3270_v45 = vpop.f32.mrb[39].mxu0  ;;  %v3313_v46 = vpop.f32.mrb[39].mxu1 }
 0x536   :  { %v3271_v48 = vadd.f32 %v3270_v45, %v2234_v31  ;;  %v3314_v49 = vadd.f32 %v3313_v46, %v2242_v26 }
 0x537   :  { %v3494_v50 = vpack.c.bf16 %v3269_v42, %v3265_v40  ;;  %v3496_v57 = vpack.c.bf16 %v3312_v44, %v3308_v41 }
 0x538   :  { %v3495_v56 = vpack.c.bf16 %v3271_v48, %v3267_v55  ;;  %v3497_v58 = vpack.c.bf16 %v3314_v49, %v3310_v35 }
 0x539   :  { %v3513_v59 = vmul.bf16 1056980736, %v3494_v50  ;;  %v3515_v60 = vmul.bf16 1056980736, %v3496_v57 }
 0x53a   :  { %v3514_v61 = vmul.bf16 1056980736, %v3495_v56  ;;  %v3516_v62 = vmul.bf16 1056980736, %v3497_v58 }
 0x53b   :  { %4771 = vtanh.bf16 %v3513_v59 }
 0x53c   :  { %4773 = vtanh.bf16 %v3515_v60 }
 0x53d   :  { %4775 = vtanh.bf16 %v3514_v61 }
 0x53e   :  { %4777 = vtanh.bf16 %v3516_v62  ;;  %v2191_v62 = vld [vmem:[%s6121_s12 + $0x10] sm:$0x7]  ;;  %s4820_s12 = smov [#allocation2]  }
 0x53f   :  { %s3706_s15 = sshll.u32 %s4820_s12, 4  ;;  %s3707_s15 = int_to_ptr.vmem [resolvable:$true] %s3706_s15 }
 0x540   :  { %s4793_s0 = scalar_lea.vmem %s3707_s15, 2432  ;;  %p4798_p1 = scmp.lt.s32.totalorder %s3707_s15, %s3707_s15 }
 0x541   :  { %p4794_p0 = scmp.ne.s32.totalorder %s3707_s15, %s4793_s0  ;;  %p4799_p2 = scmp.lt.s32.totalorder %s4793_s0, %s4793_s0 }
 0x543   :  { %p4800_p3 = por %p4799_p2, %p4798_p1 }
 0x545   :  { %p4801_p4 = pnand %p4800_p3, %p4794_p0 }
 0x546   :  { %v4772_v63 = vpop.eup %4771 }
 0x547   :  { %v4774_v0 = vpop.eup %4773  ;;  %v3551_v1 = vmul.bf16 1056980736, %v4772_v63  ;;  %v2262_v63 = vrot.slane %v2191_v62, %v6036_v52 }
 0x548   :  { %v4776_v2 = vpop.eup %4775  ;;  %v3553_v3 = vmul.bf16 1056980736, %v4774_v0  ;;  %v2270_v0 = vrot.slane %v2191_v62, %v6039_v53 }
 0x549   :  { %v4778_v4 = vpop.eup %4777  ;;  %v3570_v5 = vadd.bf16 1056980736, %v3551_v1  ;;  %v3552_v6 = vmul.bf16 1056980736, %v4776_v2 }
 0x54a   :  { %v3572_v54 = vadd.bf16 1056980736, %v3553_v3  ;;  %v3554_v7 = vmul.bf16 1056980736, %v4778_v4  ;;  %v2266_v3 = vrot.slane %v2191_v62, %v6047_v47 }
 0x54b   :  { %v3571_v8 = vadd.bf16 1056980736, %v3552_v6 }
 0x54c   :  { %v3573_v9 = vadd.bf16 1056980736, %v3554_v7 }
 0x54d   :  { %v4045_v10 = vcombine.low %v3570_v5, %v3571_v8  ;;  %v4055_v11 = vcombine.high %v3570_v5, %v3571_v8 }
 0x54e   :  { %v4046_v12 = vcombine.low %v3572_v54, %v3573_v9  ;;  %v4056_v13 = vcombine.high %v3572_v54, %v3573_v9 }
 0x54f   :  { %3682 = vst [vmem:[#allocation2 + $0x20] sm:$0xff] %v4045_v10  ;;  %3693 = vst [vmem:[#allocation2 + $0x6c] sm:$0xff] %v4055_v11 }
 0x550   :  { %3683 = vst [vmem:[#allocation2 + $0x28] sm:$0xff] %v4046_v12  ;;  %3694 = vst [vmem:[#allocation2 + $0x74] sm:$0xff] %v4056_v13 }
 0x552   :  { %v3350_v18 = vpop.f32.mrb[40].mxu0  ;;  %v3393_v19 = vpop.f32.mrb[40].mxu1 }
 0x553   :  { %v3351_v20 = vadd.f32 %v3350_v18, %v2246_v14  ;;  %v3394_v21 = vadd.f32 %v3393_v19, %v2254_v15  ;;  %v3352_v22 = vpop.f32.mrb[41].mxu0  ;;  %v3395_v24 = vpop.f32.mrb[41].mxu1 }
 0x554   :  { %v3353_v25 = vadd.f32 %v3352_v22, %v2250_v16  ;;  %v3396_v26 = vadd.f32 %v3395_v24, %v2258_v17  ;;  %v3354_v43 = vpop.f32.mrb[42].mxu0  ;;  %v3397_v27 = vpop.f32.mrb[42].mxu1 }
 0x555   :  { %v3355_v28 = vadd.f32 %v3354_v43, %v2246_v14  ;;  %v3398_v34 = vadd.f32 %v3397_v27, %v2254_v15  ;;  %v3356_v29 = vpop.f32.mrb[43].mxu0  ;;  %v3399_v30 = vpop.f32.mrb[43].mxu1 }
 0x556   :  { %v3357_v31 = vadd.f32 %v3356_v29, %v2250_v16  ;;  %v3400_v32 = vadd.f32 %v3399_v30, %v2258_v17 }
 0x557   :  { %v3498_v37 = vpack.c.bf16 %v3355_v28, %v3351_v20  ;;  %v3500_v33 = vpack.c.bf16 %v3398_v34, %v3394_v21 }
 0x558   :  { %v3499_v51 = vpack.c.bf16 %v3357_v31, %v3353_v25  ;;  %v3501_v38 = vpack.c.bf16 %v3400_v32, %v3396_v26 }
 0x559   :  { %v3517_v23 = vmul.bf16 1056980736, %v3498_v37  ;;  %v3519_v35 = vmul.bf16 1056980736, %v3500_v33 }
 0x55a   :  { %v3518_v36 = vmul.bf16 1056980736, %v3499_v51  ;;  %v3520_v39 = vmul.bf16 1056980736, %v3501_v38 }
 0x55b   :  { %4779 = vtanh.bf16 %v3517_v23 }
 0x55c   :  { %4781 = vtanh.bf16 %v3519_v35 }
 0x55d   :  { %4783 = vtanh.bf16 %v3518_v36 }
 0x55e   :  { %4785 = vtanh.bf16 %v3520_v39 }
 0x566   :  { %v4780_v40 = vpop.eup %4779 }
 0x567   :  { %v4782_v41 = vpop.eup %4781  ;;  %v3555_v42 = vmul.bf16 1056980736, %v4780_v40 }
 0x568   :  { %v4784_v44 = vpop.eup %4783  ;;  %v3557_v45 = vmul.bf16 1056980736, %v4782_v41 }
 0x569   :  { %v4786_v46 = vpop.eup %4785  ;;  %v3574_v55 = vadd.bf16 1056980736, %v3555_v42  ;;  %v3556_v48 = vmul.bf16 1056980736, %v4784_v44 }
 0x56a   :  { %v3576_v49 = vadd.bf16 1056980736, %v3557_v45  ;;  %v3558_v50 = vmul.bf16 1056980736, %v4786_v46 }
 0x56b   :  { %v3575_v57 = vadd.bf16 1056980736, %v3556_v48 }
 0x56c   :  { %v3577_v56 = vadd.bf16 1056980736, %v3558_v50 }
 0x56d   :  { %v4047_v58 = vcombine.low %v3574_v55, %v3575_v57  ;;  %v4057_v59 = vcombine.high %v3574_v55, %v3575_v57 }
 0x56e   :  { %v4048_v60 = vcombine.low %v3576_v49, %v3577_v56  ;;  %v4058_v61 = vcombine.high %v3576_v49, %v3577_v56 }
 0x56f   :  { %3684 = vst [vmem:[#allocation2 + $0x30] sm:$0xff] %v4047_v58  ;;  %3695 = vst [vmem:[#allocation2 + $0x7c] sm:$0xff] %v4057_v59 }
 0x570   :  { %3685 = vst [vmem:[#allocation2 + $0x38] sm:$0xff] %v4048_v60  ;;  %3696 = vst [vmem:[#allocation2 + $0x84] sm:$0xff] %v4058_v61 }
 0x572   :  { %v3436_v1 = vpop.f32.mrb[44].mxu0  ;;  %v3479_v2 = vpop.f32.mrb[44].mxu1 }
 0x573   :  { %v3438_v4 = vpop.f32.mrb[45].mxu0  ;;  %v4362_v5 = vpop.f32.mrb[45].mxu1  ;;  %v3437_v7 = vadd.f32 %v3436_v1, %v2262_v63  ;;  %v3480_v8 = vadd.f32 %v3479_v2, %v2270_v0 }
 0x574   :  { %v3440_v6 = vpop.f32.mrb[46].mxu0  ;;  %v3482_v54 = vpop.f32.mrb[46].mxu1  ;;  %v3439_v13 = vadd.f32 %v3438_v4, %v2266_v3 }
 0x575   :  { %v3441_v9 = vadd.f32 %v3440_v6, %v2262_v63  ;;  %v3483_v10 = vadd.f32 %v3482_v54, %v2270_v0  ;;  %v3442_v11 = vpop.f32.mrb[47].mxu0  ;;  %v4363_v12 = vpop.f32.mrb[47].mxu1 }
 0x576   :  { %v3443_v14 = vadd.f32 %v3442_v11, %v2266_v3 }
 0x577   :  { %v3502_v15 = vpack.c.bf16 %v3441_v9, %v3437_v7  ;;  %v3504_v52 = vpack.c.bf16 %v3483_v10, %v3480_v8 }
 0x578   :  { %v3503_v16 = vpack.c.bf16 %v3443_v14, %v3439_v13 }
 0x579   :  { %v3521_v53 = vmul.bf16 1056980736, %v3502_v15  ;;  %v3523_v17 = vmul.bf16 1056980736, %v3504_v52 }
 0x57a   :  { %v3522_v18 = vmul.bf16 1056980736, %v3503_v16 }
 0x57b   :  { %4787 = vtanh.bf16 %v3521_v53 }
 0x57c   :  { %4789 = vtanh.bf16 %v3523_v17 }
 0x57d   :  { %4791 = vtanh.bf16 %v3522_v18 }
 0x586   :  { %v4788_v47 = vpop.eup %4787 }
 0x587   :  { %v4790_v19 = vpop.eup %4789  ;;  %v3559_v20 = vmul.bf16 1056980736, %v4788_v47 }
 0x588   :  { %v4792_v21 = vpop.eup %4791  ;;  %v3561_v22 = vmul.bf16 1056980736, %v4790_v19 }
 0x589   :  { %v3578_v24 = vadd.bf16 1056980736, %v3559_v20  ;;  %v3560_v25 = vmul.bf16 1056980736, %v4792_v21 }
 0x58a   :  { %v3580_v26 = vadd.bf16 1056980736, %v3561_v22 }
 0x58b   :  { %v3579_v43 = vadd.bf16 1056980736, %v3560_v25 }
 0x58c   :  { %v4050_v27 = vcombine.low %v3580_v26, %v3580_v26  ;;  %v4060_v28 = vcombine.high %v3580_v26, %v3580_v26 }
 0x58d   :  { %v4049_v34 = vcombine.low %v3578_v24, %v3579_v43  ;;  %v4059_v29 = vcombine.high %v3578_v24, %v3579_v43 }
 0x58e   :  { %3688 = vst.msk [vmem:[#allocation2 + $0x48] sm:$0xf] %vm3687_vm4, %v4050_v27  ;;  %3698 = vst.msk [vmem:[#allocation2 + $0x94] sm:$0xf] %vm3687_vm4, %v4060_v28 }
 0x58f   :  { %3686 = vst [vmem:[#allocation2 + $0x40] sm:$0xff] %v4049_v34  ;;  %3697 = vst [vmem:[#allocation2 + $0x8c] sm:$0xff] %v4059_v29 }
 0x590   :  { %4804 = shalt.err (!%p4801_p4)
}
 0x591   :  { %s4805_s18 = scalar_lea.hbm %s6123_s14, 2432 }
 0x592   :  { %p4806_p5 = scmp.ne.s32.totalorder %s6123_s14, %s4805_s18  ;;  %p4809_p6 = scmp.lt.u32.totalorder %s4805_s18, %s6123_s14 }
 0x594   :  { %p4811_p7 = pnand %p4809_p6, %p4806_p5 }
 0x596   :  { %4814 = shalt.err (!%p4811_p7)
}
 0x597   :  { %s4821_s21 = smov 1216   ;;  %s4822_s22 = smov 76  }
 0x598   :  { %3712 = dma.vmem_to_hbm [thread:$0]  %s3707_s15, 2432, %s6123_s14, [#allocation3], %s4821_s21, %s4821_s21, %s4822_s22  }
 0x599   :  { %4815 = dma.done.wait [#allocation3], 2432  }
 0x59a   :  { %4816 = vsyncadd [#allocation3], 4294964864 }
 0x59b   :  { %3718 = vsyncpa [#allocation3], 1 }

</bundles_post_ra>
